<compile_context>
chip_gen: v7x
topology: tpu7x:2x2x1
jax: 0.10.0
libtpu: 0.0.40
codegen_flags: <defaults>
</compile_context>

<pallas_src>
import numpy as np
import jax
import jax.numpy as jnp
from jax import lax
from jax.experimental import pallas as pl
from jax.experimental.pallas import tpu as pltpu

NEG_SLOPE = 0.01  # PyTorch nn.LeakyReLU() default


def _leaky(x):
    return jnp.maximum(x, NEG_SLOPE * x)


def _weight_norm(v, g):
    """PyTorch nn.utils.weight_norm (dim=0): w = g * v / ||v||_{dims!=0}."""
    norm = jnp.sqrt(jnp.sum(v * v, axis=tuple(range(1, v.ndim)), keepdims=True))
    return v * (g.reshape((-1,) + (1,) * (v.ndim - 1)) / norm)


def _make_resstack_kernel(H, W, C, HWp, L, dilations):
    """L = batch_tile * HWp lanes per grid step; each image owns a contiguous
    HWp-lane segment (HW valid positions + zero padding)."""
    K1 = 16  # conv1 im2col contraction rows (9 taps zero-padded to 16)

    def kernel(x_ref, w1_ref, b1_ref, w2_ref, b2_ref, w3_ref, b3_ref, o_ref,
               s0_ref, s1_ref):
        # Flat lane index -> image-local flat position q and column r.
        # Only constant mods (bitwise-and when power of two); loop-invariant.
        lane = lax.broadcasted_iota(jnp.int32, (1, L), 1)
        q = (lane & (HWp - 1)) if (HWp & (HWp - 1)) == 0 else lane % HWp
        r = (q & (W - 1)) if (W & (W - 1)) == 0 else q % W
        # Row-boundary masks (dilation independent): neighbor row in [0, H).
        hmask = {-1: q >= W, 0: None, 1: q < (H - 1) * W}

        def combine(a, b):
            if a is None:
                return b
            if b is None:
                return a
            return a & b

        y = x_ref[0].astype(jnp.float32)              # (1, L)

        # conv1 im2col scratch: rows 9..15 stay zero, taps rewrite rows 0..8.
        s0_ref[...] = jnp.zeros((K1, L), jnp.float32)

        for i, d in enumerate(dilations):
            taps = [(kh - 1, (kw - 1) * d) for kh in range(3) for kw in range(3)]
            wmask = {-d: r >= d, 0: None, d: r < (W - d)}
            masks = [combine(hmask[dh], wmask[dw]) for dh, dw in taps]

            def shifted(a, t):
                # a evaluated at (h + dh, w + dw); zero outside the image.
                # Lane wraps (including across the padding between images when
                # several images share the lane axis) land exactly on masked
                # (out-of-bounds-neighbor) positions, so roll+mask is exact.
                dh, dw = taps[t]
                s = dh * W + dw
                v = pltpu.roll(a, (-s) % L, 1) if (s % L) else a
                m = masks[t]
                return v if m is None else jnp.where(m, v, 0.0)
                # TODO(synk): when W (or a W-tile) is padded to a multiple of
                # 128, the dh = +/-1 taps become whole-vreg lane offsets; share
                # the 3 dw rolls across dh to cut XLU traffic ~3x.  With W=16
                # here the per-tap rolls are a small fraction of the im2col
                # copy volume, so they are kept per-tap.

            # ---- conv1: 1 -> C, one (C,16)x(16,L) MXU matmul ----------------
            a0 = _leaky(y)                                       # (1, L) f32
            for t in range(9):
                s0_ref[t:t + 1, :] = shifted(a0, t)
            h1 = jnp.dot(w1_ref[i], s0_ref[...].astype(jnp.bfloat16),
                         preferred_element_type=jnp.float32)     # (C, L)
            a1 = _leaky(h1 + b1_ref[i])                          # (C, L) f32

            # ---- conv2: C -> C, one (C,9C)x(9C,L) MXU matmul ----------------
            for t in range(9):
                s1_ref[t * C:(t + 1) * C, :] = shifted(a1, t).astype(jnp.bfloat16)
            h2 = jnp.dot(w2_ref[i], s1_ref[...],
                         preferred_element_type=jnp.float32)     # (C, L)
            a2 = _leaky(h2 + b2_ref[i])                          # (C, L) f32

            # ---- conv3: 1x1, C -> 1, residual add ---------------------------
            h3 = jnp.dot(w3_ref[i], a2.astype(jnp.bfloat16),
                         preferred_element_type=jnp.float32) + b3_ref[i]
            y = y + h3                                           # (1, L)

        o_ref[0] = y.astype(o_ref.dtype)

    return kernel


def resstack2d_forward(x, params, *, channels=16, depth=2, batch_tile=None):
    """x: (N, H, W) float32. params: per-block (w1,b1,w2,b2,w3,b3), PyTorch
    OIHW layout, weight_norm already folded in."""
    N, H, W = x.shape
    C = channels
    HW = H * W
    HWp = ((HW + 127) // 128) * 128           # lane-dense, unmasked stores
    dilations = tuple(3 ** i for i in range(depth))

    # Images folded onto the lane axis per grid step: amortizes the ~0.35 us
    # per-step overhead at small HW, while keeping >= 2 parallel steps when
    # N >= 2 so both v7x TensorCores get work.
    if batch_tile is None:
        batch_tile = max(1, min(N, 4096 // HWp))
        while N % batch_tile:
            batch_tile -= 1
        if N >= 2 and N // batch_tile < 2:
            batch_tile = max(1, N // 2)
            while N % batch_tile:
                batch_tile -= 1
    assert N % batch_tile == 0
    G = N // batch_tile
    L = batch_tile * HWp

    # ---- weight packing (host side, once) ----------------------------------
    # conv1 OIHW (C,1,3,3) -> (C,9) tap-minor, zero-padded to (C,16).
    w1p = jnp.stack([jnp.pad(p[0].reshape(C, 9), ((0, 0), (0, 7)))
                     for p in params]).astype(jnp.bfloat16)       # (depth,C,16)
    b1p = jnp.stack([p[1].reshape(C, 1) for p in params]).astype(jnp.float32)
    # conv2 OIHW (C,C,3,3) -> (C, 9*C), contraction index = tap*C + c_in,
    # matching the im2col row order built in the kernel.
    w2p = jnp.stack([jnp.transpose(p[2], (0, 2, 3, 1)).reshape(C, 9 * C)
                     for p in params]).astype(jnp.bfloat16)       # (depth,C,9C)
    b2p = jnp.stack([p[3].reshape(C, 1) for p in params]).astype(jnp.float32)
    w3p = jnp.stack([p[4].reshape(1, C) for p in params]).astype(jnp.bfloat16)
    b3p = jnp.stack([p[5].reshape(1, 1) for p in params]).astype(jnp.float32)

    # ---- input packing: pad each flattened image to HWp lanes --------------
    x_flat = x.reshape(N, HW)
    if HWp != HW:
        x_flat = jnp.pad(x_flat, ((0, 0), (0, HWp - HW)))
    x_in = x_flat.reshape(G, 1, L)

    kernel = _make_resstack_kernel(H, W, C, HWp, L, dilations)

    # ---- cost estimate & explicit VMEM budget -------------------------------
    flops_per_elem = depth * (2 * 16 * C + 2 * 9 * C * C + 2 * C)
    weight_bytes = 2 * int(w1p.size + w2p.size + w3p.size) + \
        4 * int(b1p.size + b2p.size + b3p.size)
    cost = pl.CostEstimate(
        flops=int(N * HWp * flops_per_elem),
        transcendentals=0,
        bytes_accessed=int(2 * N * HWp * 4 + weight_bytes))

    # Working set per step: f32 conv1 stack + bf16 conv2 stack + f32
    # activations + double-buffered x/out.  Default scoped VMEM (16/32 MiB)
    # is too small long before physical capacity; v7x physical is only 64 MiB.
    est = L * (16 * 4 + 9 * C * 2 + 6 * C * 4 + 8 * 4) + 4 * weight_bytes
    try:
        vmem_cap = int(pltpu.get_tpu_info().vmem_capacity_bytes)
    except Exception:
        vmem_cap = 0
    if vmem_cap <= 0:
        vmem_cap = 64 * 2 ** 20
    vmem_limit = int(min(max(4 * est, 32 * 2 ** 20), int(0.75 * vmem_cap)))
    # TODO(synk): for real vocoder spectrograms (HW >> 64K elements) add a
    # spatial grid axis over row blocks with a (1-row x d-col) halo so the
    # (9C, L) im2col stack stays inside v7x's 64 MiB VMEM; at the shapes used
    # here one padded image per step is both correct and lane-dense.

    out = pl.pallas_call(
        kernel,
        out_shape=jax.ShapeDtypeStruct((G, 1, L), x.dtype),
        grid_spec=pltpu.PrefetchScalarGridSpec(
            num_scalar_prefetch=0,
            grid=(G,),
            in_specs=[
                pl.BlockSpec((1, 1, L), lambda g: (g, 0, 0)),
                pl.BlockSpec((depth, C, 16), lambda g: (0, 0, 0)),
                pl.BlockSpec((depth, C, 1), lambda g: (0, 0, 0)),
                pl.BlockSpec((depth, C, 9 * C), lambda g: (0, 0, 0)),
                pl.BlockSpec((depth, C, 1), lambda g: (0, 0, 0)),
                pl.BlockSpec((depth, 1, C), lambda g: (0, 0, 0)),
                pl.BlockSpec((depth, 1, 1), lambda g: (0, 0, 0)),
            ],
            out_specs=pl.BlockSpec((1, 1, L), lambda g: (g, 0, 0)),
            scratch_shapes=[
                pltpu.VMEM((16, L), jnp.float32),       # conv1 im2col stack
                pltpu.VMEM((9 * C, L), jnp.bfloat16),   # conv2 im2col stack
            ]),
        compiler_params=pltpu.CompilerParams(
            dimension_semantics=("parallel",),
            vmem_limit_bytes=vmem_limit),
        cost_estimate=cost,
    )(x_in, w1p, b1p, w2p, b2p, w3p, b3p)

    return out.reshape(N, HWp)[:, :HW].reshape(N, H, W)


def resstack2d_reference(x, params, depth=2):
    """Pure-JAX reference (XLA convs) of ResStack2D.forward for verification."""
    y = x[:, None, :, :]
    dn = ("NCHW", "OIHW", "NCHW")
    for i, (w1, b1, w2, b2, w3, b3) in enumerate(params[:depth]):
        d = 3 ** i
        a = _leaky(y)
        a = lax.conv_general_dilated(a, w1, (1, 1), ((1, 1), (d, d)),
                                     rhs_dilation=(1, d), dimension_numbers=dn,
                                     precision=lax.Precision.HIGHEST)
        a = a + b1[None, :, None, None]
        a = _leaky(a)
        a = lax.conv_general_dilated(a, w2, (1, 1), ((1, 1), (d, d)),
                                     rhs_dilation=(1, d), dimension_numbers=dn,
                                     precision=lax.Precision.HIGHEST)
        a = a + b2[None, :, None, None]
        a = _leaky(a)
        a = lax.conv_general_dilated(a, w3, (1, 1), ((0, 0), (0, 0)),
                                     dimension_numbers=dn,
                                     precision=lax.Precision.HIGHEST)
        a = a + b3[None, :, None, None]
        y = y + a
    return y[:, 0]


if __name__ == "__main__":
    key = jax.random.PRNGKey(0)
    N, H, W = 2, 16, 16          # (batch, freq, time) spectrogram patch
    C, depth = 16, 2             # module hard-codes channels=16, depth=2

    keys = jax.random.split(key, 1 + 9 * depth)
    x = jax.random.normal(keys[0], (N, H, W), dtype=jnp.float32)

    params = []
    k = 1
    for _ in range(depth):
        v1 = 0.3 * jax.random.normal(keys[k + 0], (C, 1, 3, 3), jnp.float32)
        g1 = 1.0 + 0.1 * jax.random.normal(keys[k + 1], (C,), jnp.float32)
        b1 = 0.1 * jax.random.normal(keys[k + 2], (C,), jnp.float32)
        v2 = 0.2 * jax.random.normal(keys[k + 3], (C, C, 3, 3), jnp.float32)
        g2 = 1.0 + 0.1 * jax.random.normal(keys[k + 4], (C,), jnp.float32)
        b2 = 0.1 * jax.random.normal(keys[k + 5], (C,), jnp.float32)
        v3 = 0.3 * jax.random.normal(keys[k + 6], (1, C, 1, 1), jnp.float32)
        g3 = 1.0 + 0.1 * jax.random.normal(keys[k + 7], (1,), jnp.float32)
        b3 = 0.1 * jax.random.normal(keys[k + 8], (1,), jnp.float32)
        k += 9
        params.append((_weight_norm(v1, g1), b1,
                       _weight_norm(v2, g2), b2,
                       _weight_norm(v3, g3), b3))

    y = resstack2d_forward(x, params, channels=C, depth=depth)
    y = jax.block_until_ready(y)

    y_ref = resstack2d_reference(x, params, depth=depth)
    # bf16 MXU operands (deliberate, per perf review) vs the HIGHEST-precision
    # XLA conv reference: expected |err| is a few e-3; real layout/tap bugs
    # show up as O(0.1+) discrepancies, still well inside the assert's reach.
    np.testing.assert_allclose(np.asarray(y), np.asarray(y_ref),
                               rtol=2e-2, atol=2e-2)
    assert y.shape == (N, H, W)

    print("KERNEL_OK")
</pallas_src>

<mosaic_0001>
module attributes {stable_mosaic.version = 11 : i64} {
  func.func @kernel(%arg0: i32, %arg1: memref<1x1x256xf32, #tpu.memory_space<vmem>>, %arg2: memref<2x16x16xbf16, #tpu.memory_space<vmem>>, %arg3: memref<2x16x1xf32, #tpu.memory_space<vmem>>, %arg4: memref<2x16x144xbf16, #tpu.memory_space<vmem>>, %arg5: memref<2x16x1xf32, #tpu.memory_space<vmem>>, %arg6: memref<2x1x16xbf16, #tpu.memory_space<vmem>>, %arg7: memref<2x1x1xf32, #tpu.memory_space<vmem>>, %arg8: memref<1x1x256xf32, #tpu.memory_space<vmem>>, %arg9: memref<16x256xf32, #tpu.memory_space<vmem>>, %arg10: memref<144x256xbf16, #tpu.memory_space<vmem>>) attributes {dimension_semantics = [#tpu.dimension_semantics<parallel>], iteration_bounds = array<i64: 2>, scalar_prefetch = 0 : i64, scratch_operands = 2 : i64, tpu.core_type = #tpu.core_type<tc>, window_params = [{transform_indices = @transform_0, window_bounds = array<i64: 1, 1, 256>}, {pipeline_mode = #tpu.pipeline_mode<synchronous>, transform_indices = @transform_1, window_bounds = array<i64: 2, 16, 16>}, {pipeline_mode = #tpu.pipeline_mode<synchronous>, transform_indices = @transform_2, window_bounds = array<i64: 2, 16, 1>}, {pipeline_mode = #tpu.pipeline_mode<synchronous>, transform_indices = @transform_3, window_bounds = array<i64: 2, 16, 144>}, {pipeline_mode = #tpu.pipeline_mode<synchronous>, transform_indices = @transform_4, window_bounds = array<i64: 2, 16, 1>}, {pipeline_mode = #tpu.pipeline_mode<synchronous>, transform_indices = @transform_5, window_bounds = array<i64: 2, 1, 16>}, {pipeline_mode = #tpu.pipeline_mode<synchronous>, transform_indices = @transform_6, window_bounds = array<i64: 2, 1, 1>}, {transform_indices = @transform_7, window_bounds = array<i64: 1, 1, 256>}]} {
    %0 = tpu.iota {dimensions = array<i32: 1>} : vector<1x256xi32>
    %c255_i32 = arith.constant 255 : i32
    %1 = vector.broadcast %c255_i32 : i32 to vector<1x256xi32>
    %2 = arith.andi %0, %1 : vector<1x256xi32>
    %c15_i32 = arith.constant 15 : i32
    %3 = vector.broadcast %c15_i32 : i32 to vector<1x256xi32>
    %4 = arith.andi %2, %3 : vector<1x256xi32>
    %c16_i32 = arith.constant 16 : i32
    %5 = vector.broadcast %c16_i32 : i32 to vector<1x256xi32>
    %6 = arith.cmpi sge, %2, %5 : vector<1x256xi32>
    %c240_i32 = arith.constant 240 : i32
    %7 = vector.broadcast %c240_i32 : i32 to vector<1x256xi32>
    %8 = arith.cmpi slt, %2, %7 : vector<1x256xi32>
    %c0 = arith.constant 0 : index
    %c0_0 = arith.constant 0 : index
    %c0_1 = arith.constant 0 : index
    %9 = vector.load %arg1[%c0, %c0_0, %c0_1] : memref<1x1x256xf32, #tpu.memory_space<vmem>>, vector<1x1x256xf32>
    %10 = vector.shape_cast %9 : vector<1x1x256xf32> to vector<1x256xf32>
    %cst = arith.constant 0.000000e+00 : f32
    %11 = vector.broadcast %cst : f32 to vector<16x256xf32>
    %c0_2 = arith.constant 0 : index
    %c0_3 = arith.constant 0 : index
    %12 = vector.load %arg9[%c0_2, %c0_3] : memref<16x256xf32, #tpu.memory_space<vmem>>, vector<16x256xf32>
    tpu.vector_store %arg9[%c0_2, %c0_3], %11 {strides = array<i32>} : memref<16x256xf32, #tpu.memory_space<vmem>>, vector<16x256xf32>,
    %c1_i32 = arith.constant 1 : i32
    %13 = vector.broadcast %c1_i32 : i32 to vector<1x256xi32>
    %14 = arith.cmpi sge, %4, %13 : vector<1x256xi32>
    %c15_i32_4 = arith.constant 15 : i32
    %15 = vector.broadcast %c15_i32_4 : i32 to vector<1x256xi32>
    %16 = arith.cmpi slt, %4, %15 : vector<1x256xi32>
    %17 = arith.andi %6, %14 : vector<1x256xi1>
    %18 = arith.andi %6, %16 : vector<1x256xi1>
    %19 = arith.andi %8, %14 : vector<1x256xi1>
    %20 = arith.andi %8, %16 : vector<1x256xi1>
    %cst_5 = arith.constant 0.00999999977 : f32
    %21 = vector.broadcast %cst_5 : f32 to vector<1x256xf32>
    %22 = arith.mulf %21, %10 : vector<1x256xf32>
    %23 = arith.maximumf %10, %22 : vector<1x256xf32>
    %c17_i32 = arith.constant 17 : i32
    %24 = tpu.dynamic_rotate %23 by %c17_i32 dim 1 : vector<1x256xf32>, i32 -> vector<1x256xf32>
    %cst_6 = arith.constant 0.000000e+00 : f32
    %25 = vector.broadcast %cst_6 : f32 to vector<1x256xf32>
    %26 = arith.select %17, %24, %25 : vector<1x256xi1>, vector<1x256xf32>
    %c0_7 = arith.constant 0 : index
    %c0_8 = arith.constant 0 : index
    %27 = vector.load %arg9[%c0_7, %c0_8] : memref<16x256xf32, #tpu.memory_space<vmem>>, vector<1x256xf32>
    tpu.vector_store %arg9[%c0_7, %c0_8], %26 {strides = array<i32>} : memref<16x256xf32, #tpu.memory_space<vmem>>, vector<1x256xf32>,
    %c16_i32_9 = arith.constant 16 : i32
    %28 = tpu.dynamic_rotate %23 by %c16_i32_9 dim 1 : vector<1x256xf32>, i32 -> vector<1x256xf32>
    %cst_10 = arith.constant 0.000000e+00 : f32
    %29 = vector.broadcast %cst_10 : f32 to vector<1x256xf32>
    %30 = arith.select %6, %28, %29 : vector<1x256xi1>, vector<1x256xf32>
    %c1 = arith.constant 1 : index
    %c0_11 = arith.constant 0 : index
    %31 = vector.load %arg9[%c1, %c0_11] : memref<16x256xf32, #tpu.memory_space<vmem>>, vector<1x256xf32>
    tpu.vector_store %arg9[%c1, %c0_11], %30 {strides = array<i32>} : memref<16x256xf32, #tpu.memory_space<vmem>>, vector<1x256xf32>,
    %c15_i32_12 = arith.constant 15 : i32
    %32 = tpu.dynamic_rotate %23 by %c15_i32_12 dim 1 : vector<1x256xf32>, i32 -> vector<1x256xf32>
    %cst_13 = arith.constant 0.000000e+00 : f32
    %33 = vector.broadcast %cst_13 : f32 to vector<1x256xf32>
    %34 = arith.select %18, %32, %33 : vector<1x256xi1>, vector<1x256xf32>
    %c2 = arith.constant 2 : index
    %c0_14 = arith.constant 0 : index
    %35 = vector.load %arg9[%c2, %c0_14] : memref<16x256xf32, #tpu.memory_space<vmem>>, vector<1x256xf32>
    tpu.vector_store %arg9[%c2, %c0_14], %34 {strides = array<i32>} : memref<16x256xf32, #tpu.memory_space<vmem>>, vector<1x256xf32>,
    %c1_i32_15 = arith.constant 1 : i32
    %36 = tpu.dynamic_rotate %23 by %c1_i32_15 dim 1 : vector<1x256xf32>, i32 -> vector<1x256xf32>
    %cst_16 = arith.constant 0.000000e+00 : f32
    %37 = vector.broadcast %cst_16 : f32 to vector<1x256xf32>
    %38 = arith.select %14, %36, %37 : vector<1x256xi1>, vector<1x256xf32>
    %c3 = arith.constant 3 : index
    %c0_17 = arith.constant 0 : index
    %39 = vector.load %arg9[%c3, %c0_17] : memref<16x256xf32, #tpu.memory_space<vmem>>, vector<1x256xf32>
    tpu.vector_store %arg9[%c3, %c0_17], %38 {strides = array<i32>} : memref<16x256xf32, #tpu.memory_space<vmem>>, vector<1x256xf32>,
    %c4 = arith.constant 4 : index
    %c0_18 = arith.constant 0 : index
    %40 = vector.load %arg9[%c4, %c0_18] : memref<16x256xf32, #tpu.memory_space<vmem>>, vector<1x256xf32>
    tpu.vector_store %arg9[%c4, %c0_18], %23 {strides = array<i32>} : memref<16x256xf32, #tpu.memory_space<vmem>>, vector<1x256xf32>,
    %c255_i32_19 = arith.constant 255 : i32
    %41 = tpu.dynamic_rotate %23 by %c255_i32_19 dim 1 : vector<1x256xf32>, i32 -> vector<1x256xf32>
    %cst_20 = arith.constant 0.000000e+00 : f32
    %42 = vector.broadcast %cst_20 : f32 to vector<1x256xf32>
    %43 = arith.select %16, %41, %42 : vector<1x256xi1>, vector<1x256xf32>
    %c5 = arith.constant 5 : index
    %c0_21 = arith.constant 0 : index
    %44 = vector.load %arg9[%c5, %c0_21] : memref<16x256xf32, #tpu.memory_space<vmem>>, vector<1x256xf32>
    tpu.vector_store %arg9[%c5, %c0_21], %43 {strides = array<i32>} : memref<16x256xf32, #tpu.memory_space<vmem>>, vector<1x256xf32>,
    %c241_i32 = arith.constant 241 : i32
    %45 = tpu.dynamic_rotate %23 by %c241_i32 dim 1 : vector<1x256xf32>, i32 -> vector<1x256xf32>
    %cst_22 = arith.constant 0.000000e+00 : f32
    %46 = vector.broadcast %cst_22 : f32 to vector<1x256xf32>
    %47 = arith.select %19, %45, %46 : vector<1x256xi1>, vector<1x256xf32>
    %c6 = arith.constant 6 : index
    %c0_23 = arith.constant 0 : index
    %48 = vector.load %arg9[%c6, %c0_23] : memref<16x256xf32, #tpu.memory_space<vmem>>, vector<1x256xf32>
    tpu.vector_store %arg9[%c6, %c0_23], %47 {strides = array<i32>} : memref<16x256xf32, #tpu.memory_space<vmem>>, vector<1x256xf32>,
    %c240_i32_24 = arith.constant 240 : i32
    %49 = tpu.dynamic_rotate %23 by %c240_i32_24 dim 1 : vector<1x256xf32>, i32 -> vector<1x256xf32>
    %cst_25 = arith.constant 0.000000e+00 : f32
    %50 = vector.broadcast %cst_25 : f32 to vector<1x256xf32>
    %51 = arith.select %8, %49, %50 : vector<1x256xi1>, vector<1x256xf32>
    %c7 = arith.constant 7 : index
    %c0_26 = arith.constant 0 : index
    %52 = vector.load %arg9[%c7, %c0_26] : memref<16x256xf32, #tpu.memory_space<vmem>>, vector<1x256xf32>
    tpu.vector_store %arg9[%c7, %c0_26], %51 {strides = array<i32>} : memref<16x256xf32, #tpu.memory_space<vmem>>, vector<1x256xf32>,
    %c239_i32 = arith.constant 239 : i32
    %53 = tpu.dynamic_rotate %23 by %c239_i32 dim 1 : vector<1x256xf32>, i32 -> vector<1x256xf32>
    %cst_27 = arith.constant 0.000000e+00 : f32
    %54 = vector.broadcast %cst_27 : f32 to vector<1x256xf32>
    %55 = arith.select %20, %53, %54 : vector<1x256xi1>, vector<1x256xf32>
    %c8 = arith.constant 8 : index
    %c0_28 = arith.constant 0 : index
    %56 = vector.load %arg9[%c8, %c0_28] : memref<16x256xf32, #tpu.memory_space<vmem>>, vector<1x256xf32>
    tpu.vector_store %arg9[%c8, %c0_28], %55 {strides = array<i32>} : memref<16x256xf32, #tpu.memory_space<vmem>>, vector<1x256xf32>,
    %c0_29 = arith.constant 0 : index
    %c0_30 = arith.constant 0 : index
    %c0_31 = arith.constant 0 : index
    %57 = vector.load %arg2[%c0_29, %c0_30, %c0_31] : memref<2x16x16xbf16, #tpu.memory_space<vmem>>, vector<1x16x16xbf16>
    %58 = vector.shape_cast %57 : vector<1x16x16xbf16> to vector<16x16xbf16>
    %c0_32 = arith.constant 0 : index
    %c0_33 = arith.constant 0 : index
    %59 = vector.load %arg9[%c0_32, %c0_33] : memref<16x256xf32, #tpu.memory_space<vmem>>, vector<16x256xf32>
    %60 = arith.truncf %59 : vector<16x256xf32> to vector<16x256xbf16>
    %cst_34 = arith.constant dense<0.000000e+00> : vector<16x256xf32>
    %61 = tpu.matmul %58, %60, %cst_34 {dimension_numbers = #tpu.dot_dimension_numbers<[1], [0], [0], [1], [0, 0, 1, 1], [], []>} : vector<16x16xbf16>, vector<16x256xbf16>, vector<16x256xf32> -> vector<16x256xf32>
    %c0_35 = arith.constant 0 : index
    %c0_36 = arith.constant 0 : index
    %c0_37 = arith.constant 0 : index
    %62 = vector.load %arg3[%c0_35, %c0_36, %c0_37] : memref<2x16x1xf32, #tpu.memory_space<vmem>>, vector<1x16x1xf32>
    %63 = vector.shape_cast %62 : vector<1x16x1xf32> to vector<16x1xf32>
    %64 = vector.broadcast %63 : vector<16x1xf32> to vector<16x256xf32>
    %65 = arith.addf %61, %64 : vector<16x256xf32>
    %cst_38 = arith.constant 0.00999999977 : f32
    %66 = vector.broadcast %cst_38 : f32 to vector<16x256xf32>
    %67 = arith.mulf %66, %65 : vector<16x256xf32>
    %68 = arith.maximumf %65, %67 : vector<16x256xf32>
    %c17_i32_39 = arith.constant 17 : i32
    %69 = tpu.dynamic_rotate %68 by %c17_i32_39 dim 1 : vector<16x256xf32>, i32 -> vector<16x256xf32>
    %cst_40 = arith.constant 0.000000e+00 : f32
    %70 = vector.shape_cast %17 : vector<1x256xi1> to vector<1x256xi1>
    %71 = vector.broadcast %70 : vector<1x256xi1> to vector<16x256xi1>
    %72 = vector.broadcast %cst_40 : f32 to vector<16x256xf32>
    %73 = arith.select %71, %69, %72 : vector<16x256xi1>, vector<16x256xf32>
    %74 = arith.truncf %73 : vector<16x256xf32> to vector<16x256xbf16>
    %c0_41 = arith.constant 0 : index
    %c0_42 = arith.constant 0 : index
    %75 = vector.load %arg10[%c0_41, %c0_42] : memref<144x256xbf16, #tpu.memory_space<vmem>>, vector<16x256xbf16>
    tpu.vector_store %arg10[%c0_41, %c0_42], %74 {strides = array<i32>} : memref<144x256xbf16, #tpu.memory_space<vmem>>, vector<16x256xbf16>,
    %c16_i32_43 = arith.constant 16 : i32
    %76 = tpu.dynamic_rotate %68 by %c16_i32_43 dim 1 : vector<16x256xf32>, i32 -> vector<16x256xf32>
    %cst_44 = arith.constant 0.000000e+00 : f32
    %77 = vector.shape_cast %6 : vector<1x256xi1> to vector<1x256xi1>
    %78 = vector.broadcast %77 : vector<1x256xi1> to vector<16x256xi1>
    %79 = vector.broadcast %cst_44 : f32 to vector<16x256xf32>
    %80 = arith.select %78, %76, %79 : vector<16x256xi1>, vector<16x256xf32>
    %81 = arith.truncf %80 : vector<16x256xf32> to vector<16x256xbf16>
    %c16 = arith.constant 16 : index
    %c0_45 = arith.constant 0 : index
    %82 = vector.load %arg10[%c16, %c0_45] : memref<144x256xbf16, #tpu.memory_space<vmem>>, vector<16x256xbf16>
    tpu.vector_store %arg10[%c16, %c0_45], %81 {strides = array<i32>} : memref<144x256xbf16, #tpu.memory_space<vmem>>, vector<16x256xbf16>,
    %c15_i32_46 = arith.constant 15 : i32
    %83 = tpu.dynamic_rotate %68 by %c15_i32_46 dim 1 : vector<16x256xf32>, i32 -> vector<16x256xf32>
    %cst_47 = arith.constant 0.000000e+00 : f32
    %84 = vector.shape_cast %18 : vector<1x256xi1> to vector<1x256xi1>
    %85 = vector.broadcast %84 : vector<1x256xi1> to vector<16x256xi1>
    %86 = vector.broadcast %cst_47 : f32 to vector<16x256xf32>
    %87 = arith.select %85, %83, %86 : vector<16x256xi1>, vector<16x256xf32>
    %88 = arith.truncf %87 : vector<16x256xf32> to vector<16x256xbf16>
    %c32 = arith.constant 32 : index
    %c0_48 = arith.constant 0 : index
    %89 = vector.load %arg10[%c32, %c0_48] : memref<144x256xbf16, #tpu.memory_space<vmem>>, vector<16x256xbf16>
    tpu.vector_store %arg10[%c32, %c0_48], %88 {strides = array<i32>} : memref<144x256xbf16, #tpu.memory_space<vmem>>, vector<16x256xbf16>,
    %c1_i32_49 = arith.constant 1 : i32
    %90 = tpu.dynamic_rotate %68 by %c1_i32_49 dim 1 : vector<16x256xf32>, i32 -> vector<16x256xf32>
    %cst_50 = arith.constant 0.000000e+00 : f32
    %91 = vector.shape_cast %14 : vector<1x256xi1> to vector<1x256xi1>
    %92 = vector.broadcast %91 : vector<1x256xi1> to vector<16x256xi1>
    %93 = vector.broadcast %cst_50 : f32 to vector<16x256xf32>
    %94 = arith.select %92, %90, %93 : vector<16x256xi1>, vector<16x256xf32>
    %95 = arith.truncf %94 : vector<16x256xf32> to vector<16x256xbf16>
    %c48 = arith.constant 48 : index
    %c0_51 = arith.constant 0 : index
    %96 = vector.load %arg10[%c48, %c0_51] : memref<144x256xbf16, #tpu.memory_space<vmem>>, vector<16x256xbf16>
    tpu.vector_store %arg10[%c48, %c0_51], %95 {strides = array<i32>} : memref<144x256xbf16, #tpu.memory_space<vmem>>, vector<16x256xbf16>,
    %97 = arith.truncf %68 : vector<16x256xf32> to vector<16x256xbf16>
    %c64 = arith.constant 64 : index
    %c0_52 = arith.constant 0 : index
    %98 = vector.load %arg10[%c64, %c0_52] : memref<144x256xbf16, #tpu.memory_space<vmem>>, vector<16x256xbf16>
    tpu.vector_store %arg10[%c64, %c0_52], %97 {strides = array<i32>} : memref<144x256xbf16, #tpu.memory_space<vmem>>, vector<16x256xbf16>,
    %c255_i32_53 = arith.constant 255 : i32
    %99 = tpu.dynamic_rotate %68 by %c255_i32_53 dim 1 : vector<16x256xf32>, i32 -> vector<16x256xf32>
    %cst_54 = arith.constant 0.000000e+00 : f32
    %100 = vector.shape_cast %16 : vector<1x256xi1> to vector<1x256xi1>
    %101 = vector.broadcast %100 : vector<1x256xi1> to vector<16x256xi1>
    %102 = vector.broadcast %cst_54 : f32 to vector<16x256xf32>
    %103 = arith.select %101, %99, %102 : vector<16x256xi1>, vector<16x256xf32>
    %104 = arith.truncf %103 : vector<16x256xf32> to vector<16x256xbf16>
    %c80 = arith.constant 80 : index
    %c0_55 = arith.constant 0 : index
    %105 = vector.load %arg10[%c80, %c0_55] : memref<144x256xbf16, #tpu.memory_space<vmem>>, vector<16x256xbf16>
    tpu.vector_store %arg10[%c80, %c0_55], %104 {strides = array<i32>} : memref<144x256xbf16, #tpu.memory_space<vmem>>, vector<16x256xbf16>,
    %c241_i32_56 = arith.constant 241 : i32
    %106 = tpu.dynamic_rotate %68 by %c241_i32_56 dim 1 : vector<16x256xf32>, i32 -> vector<16x256xf32>
    %cst_57 = arith.constant 0.000000e+00 : f32
    %107 = vector.shape_cast %19 : vector<1x256xi1> to vector<1x256xi1>
    %108 = vector.broadcast %107 : vector<1x256xi1> to vector<16x256xi1>
    %109 = vector.broadcast %cst_57 : f32 to vector<16x256xf32>
    %110 = arith.select %108, %106, %109 : vector<16x256xi1>, vector<16x256xf32>
    %111 = arith.truncf %110 : vector<16x256xf32> to vector<16x256xbf16>
    %c96 = arith.constant 96 : index
    %c0_58 = arith.constant 0 : index
    %112 = vector.load %arg10[%c96, %c0_58] : memref<144x256xbf16, #tpu.memory_space<vmem>>, vector<16x256xbf16>
    tpu.vector_store %arg10[%c96, %c0_58], %111 {strides = array<i32>} : memref<144x256xbf16, #tpu.memory_space<vmem>>, vector<16x256xbf16>,
    %c240_i32_59 = arith.constant 240 : i32
    %113 = tpu.dynamic_rotate %68 by %c240_i32_59 dim 1 : vector<16x256xf32>, i32 -> vector<16x256xf32>
    %cst_60 = arith.constant 0.000000e+00 : f32
    %114 = vector.shape_cast %8 : vector<1x256xi1> to vector<1x256xi1>
    %115 = vector.broadcast %114 : vector<1x256xi1> to vector<16x256xi1>
    %116 = vector.broadcast %cst_60 : f32 to vector<16x256xf32>
    %117 = arith.select %115, %113, %116 : vector<16x256xi1>, vector<16x256xf32>
    %118 = arith.truncf %117 : vector<16x256xf32> to vector<16x256xbf16>
    %c112 = arith.constant 112 : index
    %c0_61 = arith.constant 0 : index
    %119 = vector.load %arg10[%c112, %c0_61] : memref<144x256xbf16, #tpu.memory_space<vmem>>, vector<16x256xbf16>
    tpu.vector_store %arg10[%c112, %c0_61], %118 {strides = array<i32>} : memref<144x256xbf16, #tpu.memory_space<vmem>>, vector<16x256xbf16>,
    %c239_i32_62 = arith.constant 239 : i32
    %120 = tpu.dynamic_rotate %68 by %c239_i32_62 dim 1 : vector<16x256xf32>, i32 -> vector<16x256xf32>
    %cst_63 = arith.constant 0.000000e+00 : f32
    %121 = vector.shape_cast %20 : vector<1x256xi1> to vector<1x256xi1>
    %122 = vector.broadcast %121 : vector<1x256xi1> to vector<16x256xi1>
    %123 = vector.broadcast %cst_63 : f32 to vector<16x256xf32>
    %124 = arith.select %122, %120, %123 : vector<16x256xi1>, vector<16x256xf32>
    %125 = arith.truncf %124 : vector<16x256xf32> to vector<16x256xbf16>
    %c128 = arith.constant 128 : index
    %c0_64 = arith.constant 0 : index
    %126 = vector.load %arg10[%c128, %c0_64] : memref<144x256xbf16, #tpu.memory_space<vmem>>, vector<16x256xbf16>
    tpu.vector_store %arg10[%c128, %c0_64], %125 {strides = array<i32>} : memref<144x256xbf16, #tpu.memory_space<vmem>>, vector<16x256xbf16>,
    %c0_65 = arith.constant 0 : index
    %c0_66 = arith.constant 0 : index
    %c0_67 = arith.constant 0 : index
    %127 = vector.load %arg4[%c0_65, %c0_66, %c0_67] : memref<2x16x144xbf16, #tpu.memory_space<vmem>>, vector<1x16x144xbf16>
    %128 = vector.shape_cast %127 : vector<1x16x144xbf16> to vector<16x144xbf16>
    %c0_68 = arith.constant 0 : index
    %c0_69 = arith.constant 0 : index
    %129 = vector.load %arg10[%c0_68, %c0_69] : memref<144x256xbf16, #tpu.memory_space<vmem>>, vector<144x256xbf16>
    %cst_70 = arith.constant dense<0.000000e+00> : vector<16x256xf32>
    %130 = tpu.matmul %128, %129, %cst_70 {dimension_numbers = #tpu.dot_dimension_numbers<[1], [0], [0], [1], [0, 0, 1, 1], [], []>} : vector<16x144xbf16>, vector<144x256xbf16>, vector<16x256xf32> -> vector<16x256xf32>
    %c0_71 = arith.constant 0 : index
    %c0_72 = arith.constant 0 : index
    %c0_73 = arith.constant 0 : index
    %131 = vector.load %arg5[%c0_71, %c0_72, %c0_73] : memref<2x16x1xf32, #tpu.memory_space<vmem>>, vector<1x16x1xf32>
    %132 = vector.shape_cast %131 : vector<1x16x1xf32> to vector<16x1xf32>
    %133 = vector.broadcast %132 : vector<16x1xf32> to vector<16x256xf32>
    %134 = arith.addf %130, %133 : vector<16x256xf32>
    %cst_74 = arith.constant 0.00999999977 : f32
    %135 = vector.broadcast %cst_74 : f32 to vector<16x256xf32>
    %136 = arith.mulf %135, %134 : vector<16x256xf32>
    %137 = arith.maximumf %134, %136 : vector<16x256xf32>
    %c0_75 = arith.constant 0 : index
    %c0_76 = arith.constant 0 : index
    %c0_77 = arith.constant 0 : index
    %138 = vector.load %arg6[%c0_75, %c0_76, %c0_77] : memref<2x1x16xbf16, #tpu.memory_space<vmem>>, vector<1x1x16xbf16>
    %139 = vector.shape_cast %138 : vector<1x1x16xbf16> to vector<1x16xbf16>
    %140 = arith.truncf %137 : vector<16x256xf32> to vector<16x256xbf16>
    %cst_78 = arith.constant dense<0.000000e+00> : vector<1x256xf32>
    %141 = tpu.matmul %139, %140, %cst_78 {dimension_numbers = #tpu.dot_dimension_numbers<[1], [0], [0], [1], [0, 0, 1, 1], [], []>} : vector<1x16xbf16>, vector<16x256xbf16>, vector<1x256xf32> -> vector<1x256xf32>
    %c0_79 = arith.constant 0 : index
    %c0_80 = arith.constant 0 : index
    %c0_81 = arith.constant 0 : index
    %142 = vector.load %arg7[%c0_79, %c0_80, %c0_81] : memref<2x1x1xf32, #tpu.memory_space<vmem>>, vector<1x1x1xf32>
    %143 = vector.shape_cast %142 : vector<1x1x1xf32> to vector<1x1xf32>
    %144 = vector.broadcast %143 : vector<1x1xf32> to vector<1x256xf32>
    %145 = arith.addf %141, %144 : vector<1x256xf32>
    %146 = arith.addf %10, %145 : vector<1x256xf32>
    %c3_i32 = arith.constant 3 : i32
    %147 = vector.broadcast %c3_i32 : i32 to vector<1x256xi32>
    %148 = arith.cmpi sge, %4, %147 : vector<1x256xi32>
    %c13_i32 = arith.constant 13 : i32
    %149 = vector.broadcast %c13_i32 : i32 to vector<1x256xi32>
    %150 = arith.cmpi slt, %4, %149 : vector<1x256xi32>
    %151 = arith.andi %6, %148 : vector<1x256xi1>
    %152 = arith.andi %6, %150 : vector<1x256xi1>
    %153 = arith.andi %8, %148 : vector<1x256xi1>
    %154 = arith.andi %8, %150 : vector<1x256xi1>
    %cst_82 = arith.constant 0.00999999977 : f32
    %155 = vector.broadcast %cst_82 : f32 to vector<1x256xf32>
    %156 = arith.mulf %155, %146 : vector<1x256xf32>
    %157 = arith.maximumf %146, %156 : vector<1x256xf32>
    %c19_i32 = arith.constant 19 : i32
    %158 = tpu.dynamic_rotate %157 by %c19_i32 dim 1 : vector<1x256xf32>, i32 -> vector<1x256xf32>
    %cst_83 = arith.constant 0.000000e+00 : f32
    %159 = vector.broadcast %cst_83 : f32 to vector<1x256xf32>
    %160 = arith.select %151, %158, %159 : vector<1x256xi1>, vector<1x256xf32>
    %c0_84 = arith.constant 0 : index
    %c0_85 = arith.constant 0 : index
    %161 = vector.load %arg9[%c0_84, %c0_85] : memref<16x256xf32, #tpu.memory_space<vmem>>, vector<1x256xf32>
    tpu.vector_store %arg9[%c0_84, %c0_85], %160 {strides = array<i32>} : memref<16x256xf32, #tpu.memory_space<vmem>>, vector<1x256xf32>,
    %c16_i32_86 = arith.constant 16 : i32
    %162 = tpu.dynamic_rotate %157 by %c16_i32_86 dim 1 : vector<1x256xf32>, i32 -> vector<1x256xf32>
    %cst_87 = arith.constant 0.000000e+00 : f32
    %163 = vector.broadcast %cst_87 : f32 to vector<1x256xf32>
    %164 = arith.select %6, %162, %163 : vector<1x256xi1>, vector<1x256xf32>
    %c1_88 = arith.constant 1 : index
    %c0_89 = arith.constant 0 : index
    %165 = vector.load %arg9[%c1_88, %c0_89] : memref<16x256xf32, #tpu.memory_space<vmem>>, vector<1x256xf32>
    tpu.vector_store %arg9[%c1_88, %c0_89], %164 {strides = array<i32>} : memref<16x256xf32, #tpu.memory_space<vmem>>, vector<1x256xf32>,
    %c13_i32_90 = arith.constant 13 : i32
    %166 = tpu.dynamic_rotate %157 by %c13_i32_90 dim 1 : vector<1x256xf32>, i32 -> vector<1x256xf32>
    %cst_91 = arith.constant 0.000000e+00 : f32
    %167 = vector.broadcast %cst_91 : f32 to vector<1x256xf32>
    %168 = arith.select %152, %166, %167 : vector<1x256xi1>, vector<1x256xf32>
    %c2_92 = arith.constant 2 : index
    %c0_93 = arith.constant 0 : index
    %169 = vector.load %arg9[%c2_92, %c0_93] : memref<16x256xf32, #tpu.memory_space<vmem>>, vector<1x256xf32>
    tpu.vector_store %arg9[%c2_92, %c0_93], %168 {strides = array<i32>} : memref<16x256xf32, #tpu.memory_space<vmem>>, vector<1x256xf32>,
    %c3_i32_94 = arith.constant 3 : i32
    %170 = tpu.dynamic_rotate %157 by %c3_i32_94 dim 1 : vector<1x256xf32>, i32 -> vector<1x256xf32>
    %cst_95 = arith.constant 0.000000e+00 : f32
    %171 = vector.broadcast %cst_95 : f32 to vector<1x256xf32>
    %172 = arith.select %148, %170, %171 : vector<1x256xi1>, vector<1x256xf32>
    %c3_96 = arith.constant 3 : index
    %c0_97 = arith.constant 0 : index
    %173 = vector.load %arg9[%c3_96, %c0_97] : memref<16x256xf32, #tpu.memory_space<vmem>>, vector<1x256xf32>
    tpu.vector_store %arg9[%c3_96, %c0_97], %172 {strides = array<i32>} : memref<16x256xf32, #tpu.memory_space<vmem>>, vector<1x256xf32>,
    %c4_98 = arith.constant 4 : index
    %c0_99 = arith.constant 0 : index
    %174 = vector.load %arg9[%c4_98, %c0_99] : memref<16x256xf32, #tpu.memory_space<vmem>>, vector<1x256xf32>
    tpu.vector_store %arg9[%c4_98, %c0_99], %157 {strides = array<i32>} : memref<16x256xf32, #tpu.memory_space<vmem>>, vector<1x256xf32>,
    %c253_i32 = arith.constant 253 : i32
    %175 = tpu.dynamic_rotate %157 by %c253_i32 dim 1 : vector<1x256xf32>, i32 -> vector<1x256xf32>
    %cst_100 = arith.constant 0.000000e+00 : f32
    %176 = vector.broadcast %cst_100 : f32 to vector<1x256xf32>
    %177 = arith.select %150, %175, %176 : vector<1x256xi1>, vector<1x256xf32>
    %c5_101 = arith.constant 5 : index
    %c0_102 = arith.constant 0 : index
    %178 = vector.load %arg9[%c5_101, %c0_102] : memref<16x256xf32, #tpu.memory_space<vmem>>, vector<1x256xf32>
    tpu.vector_store %arg9[%c5_101, %c0_102], %177 {strides = array<i32>} : memref<16x256xf32, #tpu.memory_space<vmem>>, vector<1x256xf32>,
    %c243_i32 = arith.constant 243 : i32
    %179 = tpu.dynamic_rotate %157 by %c243_i32 dim 1 : vector<1x256xf32>, i32 -> vector<1x256xf32>
    %cst_103 = arith.constant 0.000000e+00 : f32
    %180 = vector.broadcast %cst_103 : f32 to vector<1x256xf32>
    %181 = arith.select %153, %179, %180 : vector<1x256xi1>, vector<1x256xf32>
    %c6_104 = arith.constant 6 : index
    %c0_105 = arith.constant 0 : index
    %182 = vector.load %arg9[%c6_104, %c0_105] : memref<16x256xf32, #tpu.memory_space<vmem>>, vector<1x256xf32>
    tpu.vector_store %arg9[%c6_104, %c0_105], %181 {strides = array<i32>} : memref<16x256xf32, #tpu.memory_space<vmem>>, vector<1x256xf32>,
    %c240_i32_106 = arith.constant 240 : i32
    %183 = tpu.dynamic_rotate %157 by %c240_i32_106 dim 1 : vector<1x256xf32>, i32 -> vector<1x256xf32>
    %cst_107 = arith.constant 0.000000e+00 : f32
    %184 = vector.broadcast %cst_107 : f32 to vector<1x256xf32>
    %185 = arith.select %8, %183, %184 : vector<1x256xi1>, vector<1x256xf32>
    %c7_108 = arith.constant 7 : index
    %c0_109 = arith.constant 0 : index
    %186 = vector.load %arg9[%c7_108, %c0_109] : memref<16x256xf32, #tpu.memory_space<vmem>>, vector<1x256xf32>
    tpu.vector_store %arg9[%c7_108, %c0_109], %185 {strides = array<i32>} : memref<16x256xf32, #tpu.memory_space<vmem>>, vector<1x256xf32>,
    %c237_i32 = arith.constant 237 : i32
    %187 = tpu.dynamic_rotate %157 by %c237_i32 dim 1 : vector<1x256xf32>, i32 -> vector<1x256xf32>
    %cst_110 = arith.constant 0.000000e+00 : f32
    %188 = vector.broadcast %cst_110 : f32 to vector<1x256xf32>
    %189 = arith.select %154, %187, %188 : vector<1x256xi1>, vector<1x256xf32>
    %c8_111 = arith.constant 8 : index
    %c0_112 = arith.constant 0 : index
    %190 = vector.load %arg9[%c8_111, %c0_112] : memref<16x256xf32, #tpu.memory_space<vmem>>, vector<1x256xf32>
    tpu.vector_store %arg9[%c8_111, %c0_112], %189 {strides = array<i32>} : memref<16x256xf32, #tpu.memory_space<vmem>>, vector<1x256xf32>,
    %c1_113 = arith.constant 1 : index
    %c0_114 = arith.constant 0 : index
    %c0_115 = arith.constant 0 : index
    %191 = vector.load %arg2[%c1_113, %c0_114, %c0_115] : memref<2x16x16xbf16, #tpu.memory_space<vmem>>, vector<1x16x16xbf16>
    %192 = vector.shape_cast %191 : vector<1x16x16xbf16> to vector<16x16xbf16>
    %c0_116 = arith.constant 0 : index
    %c0_117 = arith.constant 0 : index
    %193 = vector.load %arg9[%c0_116, %c0_117] : memref<16x256xf32, #tpu.memory_space<vmem>>, vector<16x256xf32>
    %194 = arith.truncf %193 : vector<16x256xf32> to vector<16x256xbf16>
    %cst_118 = arith.constant dense<0.000000e+00> : vector<16x256xf32>
    %195 = tpu.matmul %192, %194, %cst_118 {dimension_numbers = #tpu.dot_dimension_numbers<[1], [0], [0], [1], [0, 0, 1, 1], [], []>} : vector<16x16xbf16>, vector<16x256xbf16>, vector<16x256xf32> -> vector<16x256xf32>
    %c1_119 = arith.constant 1 : index
    %c0_120 = arith.constant 0 : index
    %c0_121 = arith.constant 0 : index
    %196 = vector.load %arg3[%c1_119, %c0_120, %c0_121] : memref<2x16x1xf32, #tpu.memory_space<vmem>>, vector<1x16x1xf32>
    %197 = vector.shape_cast %196 : vector<1x16x1xf32> to vector<16x1xf32>
    %198 = vector.broadcast %197 : vector<16x1xf32> to vector<16x256xf32>
    %199 = arith.addf %195, %198 : vector<16x256xf32>
    %cst_122 = arith.constant 0.00999999977 : f32
    %200 = vector.broadcast %cst_122 : f32 to vector<16x256xf32>
    %201 = arith.mulf %200, %199 : vector<16x256xf32>
    %202 = arith.maximumf %199, %201 : vector<16x256xf32>
    %c19_i32_123 = arith.constant 19 : i32
    %203 = tpu.dynamic_rotate %202 by %c19_i32_123 dim 1 : vector<16x256xf32>, i32 -> vector<16x256xf32>
    %cst_124 = arith.constant 0.000000e+00 : f32
    %204 = vector.shape_cast %151 : vector<1x256xi1> to vector<1x256xi1>
    %205 = vector.broadcast %204 : vector<1x256xi1> to vector<16x256xi1>
    %206 = vector.broadcast %cst_124 : f32 to vector<16x256xf32>
    %207 = arith.select %205, %203, %206 : vector<16x256xi1>, vector<16x256xf32>
    %208 = arith.truncf %207 : vector<16x256xf32> to vector<16x256xbf16>
    %c0_125 = arith.constant 0 : index
    %c0_126 = arith.constant 0 : index
    %209 = vector.load %arg10[%c0_125, %c0_126] : memref<144x256xbf16, #tpu.memory_space<vmem>>, vector<16x256xbf16>
    tpu.vector_store %arg10[%c0_125, %c0_126], %208 {strides = array<i32>} : memref<144x256xbf16, #tpu.memory_space<vmem>>, vector<16x256xbf16>,
    %c16_i32_127 = arith.constant 16 : i32
    %210 = tpu.dynamic_rotate %202 by %c16_i32_127 dim 1 : vector<16x256xf32>, i32 -> vector<16x256xf32>
    %cst_128 = arith.constant 0.000000e+00 : f32
    %211 = vector.shape_cast %6 : vector<1x256xi1> to vector<1x256xi1>
    %212 = vector.broadcast %211 : vector<1x256xi1> to vector<16x256xi1>
    %213 = vector.broadcast %cst_128 : f32 to vector<16x256xf32>
    %214 = arith.select %212, %210, %213 : vector<16x256xi1>, vector<16x256xf32>
    %215 = arith.truncf %214 : vector<16x256xf32> to vector<16x256xbf16>
    %c16_129 = arith.constant 16 : index
    %c0_130 = arith.constant 0 : index
    %216 = vector.load %arg10[%c16_129, %c0_130] : memref<144x256xbf16, #tpu.memory_space<vmem>>, vector<16x256xbf16>
    tpu.vector_store %arg10[%c16_129, %c0_130], %215 {strides = array<i32>} : memref<144x256xbf16, #tpu.memory_space<vmem>>, vector<16x256xbf16>,
    %c13_i32_131 = arith.constant 13 : i32
    %217 = tpu.dynamic_rotate %202 by %c13_i32_131 dim 1 : vector<16x256xf32>, i32 -> vector<16x256xf32>
    %cst_132 = arith.constant 0.000000e+00 : f32
    %218 = vector.shape_cast %152 : vector<1x256xi1> to vector<1x256xi1>
    %219 = vector.broadcast %218 : vector<1x256xi1> to vector<16x256xi1>
    %220 = vector.broadcast %cst_132 : f32 to vector<16x256xf32>
    %221 = arith.select %219, %217, %220 : vector<16x256xi1>, vector<16x256xf32>
    %222 = arith.truncf %221 : vector<16x256xf32> to vector<16x256xbf16>
    %c32_133 = arith.constant 32 : index
    %c0_134 = arith.constant 0 : index
    %223 = vector.load %arg10[%c32_133, %c0_134] : memref<144x256xbf16, #tpu.memory_space<vmem>>, vector<16x256xbf16>
    tpu.vector_store %arg10[%c32_133, %c0_134], %222 {strides = array<i32>} : memref<144x256xbf16, #tpu.memory_space<vmem>>, vector<16x256xbf16>,
    %c3_i32_135 = arith.constant 3 : i32
    %224 = tpu.dynamic_rotate %202 by %c3_i32_135 dim 1 : vector<16x256xf32>, i32 -> vector<16x256xf32>
    %cst_136 = arith.constant 0.000000e+00 : f32
    %225 = vector.shape_cast %148 : vector<1x256xi1> to vector<1x256xi1>
    %226 = vector.broadcast %225 : vector<1x256xi1> to vector<16x256xi1>
    %227 = vector.broadcast %cst_136 : f32 to vector<16x256xf32>
    %228 = arith.select %226, %224, %227 : vector<16x256xi1>, vector<16x256xf32>
    %229 = arith.truncf %228 : vector<16x256xf32> to vector<16x256xbf16>
    %c48_137 = arith.constant 48 : index
    %c0_138 = arith.constant 0 : index
    %230 = vector.load %arg10[%c48_137, %c0_138] : memref<144x256xbf16, #tpu.memory_space<vmem>>, vector<16x256xbf16>
    tpu.vector_store %arg10[%c48_137, %c0_138], %229 {strides = array<i32>} : memref<144x256xbf16, #tpu.memory_space<vmem>>, vector<16x256xbf16>,
    %231 = arith.truncf %202 : vector<16x256xf32> to vector<16x256xbf16>
    %c64_139 = arith.constant 64 : index
    %c0_140 = arith.constant 0 : index
    %232 = vector.load %arg10[%c64_139, %c0_140] : memref<144x256xbf16, #tpu.memory_space<vmem>>, vector<16x256xbf16>
    tpu.vector_store %arg10[%c64_139, %c0_140], %231 {strides = array<i32>} : memref<144x256xbf16, #tpu.memory_space<vmem>>, vector<16x256xbf16>,
    %c253_i32_141 = arith.constant 253 : i32
    %233 = tpu.dynamic_rotate %202 by %c253_i32_141 dim 1 : vector<16x256xf32>, i32 -> vector<16x256xf32>
    %cst_142 = arith.constant 0.000000e+00 : f32
    %234 = vector.shape_cast %150 : vector<1x256xi1> to vector<1x256xi1>
    %235 = vector.broadcast %234 : vector<1x256xi1> to vector<16x256xi1>
    %236 = vector.broadcast %cst_142 : f32 to vector<16x256xf32>
    %237 = arith.select %235, %233, %236 : vector<16x256xi1>, vector<16x256xf32>
    %238 = arith.truncf %237 : vector<16x256xf32> to vector<16x256xbf16>
    %c80_143 = arith.constant 80 : index
    %c0_144 = arith.constant 0 : index
    %239 = vector.load %arg10[%c80_143, %c0_144] : memref<144x256xbf16, #tpu.memory_space<vmem>>, vector<16x256xbf16>
    tpu.vector_store %arg10[%c80_143, %c0_144], %238 {strides = array<i32>} : memref<144x256xbf16, #tpu.memory_space<vmem>>, vector<16x256xbf16>,
    %c243_i32_145 = arith.constant 243 : i32
    %240 = tpu.dynamic_rotate %202 by %c243_i32_145 dim 1 : vector<16x256xf32>, i32 -> vector<16x256xf32>
    %cst_146 = arith.constant 0.000000e+00 : f32
    %241 = vector.shape_cast %153 : vector<1x256xi1> to vector<1x256xi1>
    %242 = vector.broadcast %241 : vector<1x256xi1> to vector<16x256xi1>
    %243 = vector.broadcast %cst_146 : f32 to vector<16x256xf32>
    %244 = arith.select %242, %240, %243 : vector<16x256xi1>, vector<16x256xf32>
    %245 = arith.truncf %244 : vector<16x256xf32> to vector<16x256xbf16>
    %c96_147 = arith.constant 96 : index
    %c0_148 = arith.constant 0 : index
    %246 = vector.load %arg10[%c96_147, %c0_148] : memref<144x256xbf16, #tpu.memory_space<vmem>>, vector<16x256xbf16>
    tpu.vector_store %arg10[%c96_147, %c0_148], %245 {strides = array<i32>} : memref<144x256xbf16, #tpu.memory_space<vmem>>, vector<16x256xbf16>,
    %c240_i32_149 = arith.constant 240 : i32
    %247 = tpu.dynamic_rotate %202 by %c240_i32_149 dim 1 : vector<16x256xf32>, i32 -> vector<16x256xf32>
    %cst_150 = arith.constant 0.000000e+00 : f32
    %248 = vector.shape_cast %8 : vector<1x256xi1> to vector<1x256xi1>
    %249 = vector.broadcast %248 : vector<1x256xi1> to vector<16x256xi1>
    %250 = vector.broadcast %cst_150 : f32 to vector<16x256xf32>
    %251 = arith.select %249, %247, %250 : vector<16x256xi1>, vector<16x256xf32>
    %252 = arith.truncf %251 : vector<16x256xf32> to vector<16x256xbf16>
    %c112_151 = arith.constant 112 : index
    %c0_152 = arith.constant 0 : index
    %253 = vector.load %arg10[%c112_151, %c0_152] : memref<144x256xbf16, #tpu.memory_space<vmem>>, vector<16x256xbf16>
    tpu.vector_store %arg10[%c112_151, %c0_152], %252 {strides = array<i32>} : memref<144x256xbf16, #tpu.memory_space<vmem>>, vector<16x256xbf16>,
    %c237_i32_153 = arith.constant 237 : i32
    %254 = tpu.dynamic_rotate %202 by %c237_i32_153 dim 1 : vector<16x256xf32>, i32 -> vector<16x256xf32>
    %cst_154 = arith.constant 0.000000e+00 : f32
    %255 = vector.shape_cast %154 : vector<1x256xi1> to vector<1x256xi1>
    %256 = vector.broadcast %255 : vector<1x256xi1> to vector<16x256xi1>
    %257 = vector.broadcast %cst_154 : f32 to vector<16x256xf32>
    %258 = arith.select %256, %254, %257 : vector<16x256xi1>, vector<16x256xf32>
    %259 = arith.truncf %258 : vector<16x256xf32> to vector<16x256xbf16>
    %c128_155 = arith.constant 128 : index
    %c0_156 = arith.constant 0 : index
    %260 = vector.load %arg10[%c128_155, %c0_156] : memref<144x256xbf16, #tpu.memory_space<vmem>>, vector<16x256xbf16>
    tpu.vector_store %arg10[%c128_155, %c0_156], %259 {strides = array<i32>} : memref<144x256xbf16, #tpu.memory_space<vmem>>, vector<16x256xbf16>,
    %c1_157 = arith.constant 1 : index
    %c0_158 = arith.constant 0 : index
    %c0_159 = arith.constant 0 : index
    %261 = vector.load %arg4[%c1_157, %c0_158, %c0_159] : memref<2x16x144xbf16, #tpu.memory_space<vmem>>, vector<1x16x144xbf16>
    %262 = vector.shape_cast %261 : vector<1x16x144xbf16> to vector<16x144xbf16>
    %c0_160 = arith.constant 0 : index
    %c0_161 = arith.constant 0 : index
    %263 = vector.load %arg10[%c0_160, %c0_161] : memref<144x256xbf16, #tpu.memory_space<vmem>>, vector<144x256xbf16>
    %cst_162 = arith.constant dense<0.000000e+00> : vector<16x256xf32>
    %264 = tpu.matmul %262, %263, %cst_162 {dimension_numbers = #tpu.dot_dimension_numbers<[1], [0], [0], [1], [0, 0, 1, 1], [], []>} : vector<16x144xbf16>, vector<144x256xbf16>, vector<16x256xf32> -> vector<16x256xf32>
    %c1_163 = arith.constant 1 : index
    %c0_164 = arith.constant 0 : index
    %c0_165 = arith.constant 0 : index
    %265 = vector.load %arg5[%c1_163, %c0_164, %c0_165] : memref<2x16x1xf32, #tpu.memory_space<vmem>>, vector<1x16x1xf32>
    %266 = vector.shape_cast %265 : vector<1x16x1xf32> to vector<16x1xf32>
    %267 = vector.broadcast %266 : vector<16x1xf32> to vector<16x256xf32>
    %268 = arith.addf %264, %267 : vector<16x256xf32>
    %cst_166 = arith.constant 0.00999999977 : f32
    %269 = vector.broadcast %cst_166 : f32 to vector<16x256xf32>
    %270 = arith.mulf %269, %268 : vector<16x256xf32>
    %271 = arith.maximumf %268, %270 : vector<16x256xf32>
    %c1_167 = arith.constant 1 : index
    %c0_168 = arith.constant 0 : index
    %c0_169 = arith.constant 0 : index
    %272 = vector.load %arg6[%c1_167, %c0_168, %c0_169] : memref<2x1x16xbf16, #tpu.memory_space<vmem>>, vector<1x1x16xbf16>
    %273 = vector.shape_cast %272 : vector<1x1x16xbf16> to vector<1x16xbf16>
    %274 = arith.truncf %271 : vector<16x256xf32> to vector<16x256xbf16>
    %cst_170 = arith.constant dense<0.000000e+00> : vector<1x256xf32>
    %275 = tpu.matmul %273, %274, %cst_170 {dimension_numbers = #tpu.dot_dimension_numbers<[1], [0], [0], [1], [0, 0, 1, 1], [], []>} : vector<1x16xbf16>, vector<16x256xbf16>, vector<1x256xf32> -> vector<1x256xf32>
    %c1_171 = arith.constant 1 : index
    %c0_172 = arith.constant 0 : index
    %c0_173 = arith.constant 0 : index
    %276 = vector.load %arg7[%c1_171, %c0_172, %c0_173] : memref<2x1x1xf32, #tpu.memory_space<vmem>>, vector<1x1x1xf32>
    %277 = vector.shape_cast %276 : vector<1x1x1xf32> to vector<1x1xf32>
    %278 = vector.broadcast %277 : vector<1x1xf32> to vector<1x256xf32>
    %279 = arith.addf %275, %278 : vector<1x256xf32>
    %280 = arith.addf %146, %279 : vector<1x256xf32>
    %c0_174 = arith.constant 0 : index
    %c0_175 = arith.constant 0 : index
    %c0_176 = arith.constant 0 : index
    %281 = vector.load %arg8[%c0_174, %c0_175, %c0_176] : memref<1x1x256xf32, #tpu.memory_space<vmem>>, vector<1x1x256xf32>
    %282 = vector.shape_cast %281 : vector<1x1x256xf32> to vector<1x256xf32>
    %283 = vector.shape_cast %280 : vector<1x256xf32> to vector<1x1x256xf32>
    tpu.vector_store %arg8[%c0_174, %c0_175, %c0_176], %283 {strides = array<i32>} : memref<1x1x256xf32, #tpu.memory_space<vmem>>, vector<1x1x256xf32>,
    return
  }
  func.func @transform_0(%arg0: i32) -> (i32, i32, i32) {
    %c0_i32 = arith.constant 0 : i32
    %c0_i32_0 = arith.constant 0 : i32
    %c0_i32_1 = arith.constant 0 : i32
    return %arg0, %c0_i32, %c0_i32_0 : i32, i32, i32
  }
  func.func @transform_1(%arg0: i32) -> (i32, i32, i32) {
    %c0_i32 = arith.constant 0 : i32
    %c0_i32_0 = arith.constant 0 : i32
    %c0_i32_1 = arith.constant 0 : i32
    %c0_i32_2 = arith.constant 0 : i32
    return %c0_i32, %c0_i32_0, %c0_i32_1 : i32, i32, i32
  }
  func.func @transform_2(%arg0: i32) -> (i32, i32, i32) {
    %c0_i32 = arith.constant 0 : i32
    %c0_i32_0 = arith.constant 0 : i32
    %c0_i32_1 = arith.constant 0 : i32
    %c0_i32_2 = arith.constant 0 : i32
    return %c0_i32, %c0_i32_0, %c0_i32_1 : i32, i32, i32
  }
  func.func @transform_3(%arg0: i32) -> (i32, i32, i32) {
    %c0_i32 = arith.constant 0 : i32
    %c0_i32_0 = arith.constant 0 : i32
    %c0_i32_1 = arith.constant 0 : i32
    %c0_i32_2 = arith.constant 0 : i32
    return %c0_i32, %c0_i32_0, %c0_i32_1 : i32, i32, i32
  }
  func.func @transform_4(%arg0: i32) -> (i32, i32, i32) {
    %c0_i32 = arith.constant 0 : i32
    %c0_i32_0 = arith.constant 0 : i32
    %c0_i32_1 = arith.constant 0 : i32
    %c0_i32_2 = arith.constant 0 : i32
    return %c0_i32, %c0_i32_0, %c0_i32_1 : i32, i32, i32
  }
  func.func @transform_5(%arg0: i32) -> (i32, i32, i32) {
    %c0_i32 = arith.constant 0 : i32
    %c0_i32_0 = arith.constant 0 : i32
    %c0_i32_1 = arith.constant 0 : i32
    %c0_i32_2 = arith.constant 0 : i32
    return %c0_i32, %c0_i32_0, %c0_i32_1 : i32, i32, i32
  }
  func.func @transform_6(%arg0: i32) -> (i32, i32, i32) {
    %c0_i32 = arith.constant 0 : i32
    %c0_i32_0 = arith.constant 0 : i32
    %c0_i32_1 = arith.constant 0 : i32
    %c0_i32_2 = arith.constant 0 : i32
    return %c0_i32, %c0_i32_0, %c0_i32_1 : i32, i32, i32
  }
  func.func @transform_7(%arg0: i32) -> (i32, i32, i32) {
    %c0_i32 = arith.constant 0 : i32
    %c0_i32_0 = arith.constant 0 : i32
    %c0_i32_1 = arith.constant 0 : i32
    return %arg0, %c0_i32, %c0_i32_0 : i32, i32, i32
  }
}

</mosaic_0001>

<bundles_post_ra>
// kernel: tpu_custom_call.1
= control target key start
LH: loop header
LB: loop body
LE: loop exit
PB: predicated region body
PF: predicated region fallthrough
CT: control target
= control target key end

     0   :  { %12 = vsyncpa [#allocation5], 0  ;;  %s3118_s0 = inlined_call_operand.vmem [shape: f32[2,1,256], index: 0, kind: input, shape index: {}]   ;;  %s3119_s1 = inlined_call_operand.vmem [shape: bf16[2,16,16], index: 1, kind: input, shape index: {}]   ;;  %s3120_s2 = inlined_call_operand.vmem [shape: f32[2,16,1], index: 2, kind: input, shape index: {}]   ;;  %s3121_s3 = inlined_call_operand.vmem [shape: bf16[2,16,144], index: 3, kind: input, shape index: {}]   ;;  %s3122_s4 = inlined_call_operand.vmem [shape: f32[2,16,1], index: 4, kind: input, shape index: {}]   ;;  %s3123_s5 = inlined_call_operand.vmem [shape: bf16[2,1,16], index: 5, kind: input, shape index: {}]   ;;  %s3124_s6 = inlined_call_operand.vmem [shape: f32[2,1,1], index: 6, kind: input, shape index: {}]   ;;  %s3125_s7 = inlined_call_operand.hbm [shape: f32[2,1,256], index: 7, kind: output, shape index: {}]  }
   0x1   :  { %14 = vsyncpa [#allocation5 + $0x1], 0  ;;  %s2251_s24 = smov 0   ;;  %s2253_s25 = smov 0  }
   0x2   :  { %s2255_s26 = smov 0   ;;  %s2257_s27 = smov 0  }
   0x3 LB: > { %s2272_s28 = sadd.s32 4294967295, %s2191_s27   ;;  %s1785_s29 = sadd.s32 4294967294, %s2191_s27   ;;  %s2191_s27 = sphi %s2257_s27, %s3223_s27   ;;  %s2187_s26 = sphi %s2255_s26, %s3222_s26   ;;  %s2183_s25 = sphi %s2253_s25, %s3221_s25   ;;  %s2179_s24 = sphi %s2251_s24, %s3220_s24  }
   0x4   : > { %s2276_s30 = sadd.s32 1, %s2191_s27   ;;  %s179_s8 = sadd.s32 1, %s2187_s26 }
   0x5   : > { %s176_s9 = ssub.s32 %s2191_s27, %s2276_s30  ;;  %p189_p0 = scmp.ne.s32.totalorder %s2187_s26, %s2183_s25 }
   0x6   : > { %p177_p1 = scmp.eq.s32.totalorder %s176_s9, 0  ;;  %p190_p2 = scmp.eq.s32.totalorder %s2272_s28, 1 }
   0x7   : > { %p195_p3 = scmp.ne.s32.totalorder %s2183_s25, %s2179_s24  ;;  %p196_p4 = scmp.eq.s32.totalorder %s1785_s29, 1 }
   0x8   : > { %s2287_s10 = scalar_select %p177_p1, %s2187_s26, %s179_s8  }
   0x9   : > { %p2289_p5 = por %p190_p2, %p189_p0  ;;  %p2293_p6 = por %p196_p4, %p195_p3 }
   0xa   : > { %p1788_p7 = scmp.ge.s32.totalorder %s2191_s27, 1  ;;  %p239_p8 = scmp.lt.s32.totalorder %s2191_s27, 3 }
   0xc   : > { %p240_p9 = pnand %p1788_p7, %p239_p8 }
   0xd   : > { %p270_p10 = scmp.lt.s32.totalorder (!%p240_p9), %s2272_s28, 1  ;;  %v275_v0 = vlaneseq (!%p240_p9)  ;;  %v2193_v1 = vmov (!%p240_p9), 0.0   ;;  %s2194_s18 = smov (!%p240_p9), 16   ;;  %v2202_v11 = vmov (!%p240_p9), 0   ;;  %v570_v12 = vld [vmem:[%s3120_s2] sm:$0xff] (!%p240_p9)  ;;  %v571_v13 = vld [vmem:[%s3120_s2 + $0x8] sm:$0xff] (!%p240_p9) }
   0xe   : > { %243 = sbr.rel (%p240_p9) target bundleno = 2040 (0x7f8), region = 48  ;;  %287 = vst [vmem:[#allocation2] sm:$0xff] (!%p240_p9), %v2193_v1  ;;  %288 = vst [vmem:[#allocation2 + $0x8] sm:$0xff] (!%p240_p9), %v2193_v1  ;;  %s2195_s19 = smov (!%p240_p9), 17   ;;  %623 = vmatprep.mubr.bf16.mxu1 (!%p240_p9), %v2202_v11  ;;  %1959 = vset.pattern.permute.xlu0 (!%p240_p9), %v2202_v11  ;;  %v2203_v18 = vmov (!%p240_p9), 1966171168  }
   0xf   : > { %289 = vst [vmem:[#allocation2 + $0x10] sm:$0xff] (!%p240_p9), %v2193_v1  ;;  %290 = vst [vmem:[#allocation2 + $0x18] sm:$0xff] (!%p240_p9), %v2193_v1  ;;  %v2301_v2 = vshrl.u32 (!%p240_p9), %v275_v0, 7  ;;  %vm2314_vm0 = vcmp.lt.s32.totalorder (!%p240_p9), %v275_v0, 256  ;;  %s2196_s20 = smov (!%p240_p9), 15   ;;  %s2197_s21 = smov (!%p240_p9), 1   ;;  %1960 = vset.pattern.permute.xlu1 (!%p240_p9), %v2202_v11  ;;  %981 = vmatprep.mubr.bf16.mxu0 (!%p240_p9), %v2202_v11  ;;  %v329_v19 = vunpack.c.l.s4 (!%p240_p9), %v2203_v18 }
  0x10   : > { %s2198_s22 = smov (!%p240_p9), 127   ;;  %s2199_s23 = smov (!%p240_p9), 113   ;;  %v2349_v14 = vand.u32 (!%p240_p9), 127, %v275_v0  ;;  %v2128_v62 = vld [vmem:[%s3121_s3 + $0x10] ss:$8 sps:$4 sm:$0xff] (!%p240_p9)  }
  0x11   : > { %v2310_v5 = vsub.s32 (!%p240_p9), 0, %v2301_v2  ;;  %v312_v7 = vsub.s32 (!%p240_p9), 1, %v2301_v2  ;;  %s2200_s29 = smov (!%p240_p9), 112   ;;  %s2201_s8 = smov (!%p240_p9), 111   ;;  %v330_v22 = vunpack.c.0.s8 (!%p240_p9), %v329_v19 }
  0x12   : > { %v277_v15 = vadd.s32 (!%p240_p9), 128, %v2349_v14  ;;  %v278_v16 = vand.u32 (!%p240_p9), 255, %v2349_v14  ;;  %vm353_vm3 = vcmp.lt.s32.totalorder (!%p240_p9), %v2349_v14, 16  ;;  %vm320_vm4 = vcmp.lt.s32.totalorder (!%p240_p9), %v2349_v14, 17  ;;  %s2205_s9 = smov (!%p240_p9), 13   ;;  %s267_s16 = sand.u32 (!%p240_p9), 1, %s2183_s25  }
  0x13   : > { %v2374_v27 = vsub.s32 (!%p240_p9), %v330_v22, %v2301_v2  ;;  %vm383_vm8 = vcmp.lt.s32.totalorder (!%p240_p9), %v2349_v14, 15  ;;  %vm413_vm11 = vcmp.lt.s32.totalorder (!%p240_p9), %v2349_v14, 1  ;;  %vm3126_vm12 = vcmp.lt.s32.totalorder (!%p240_p9), %v2349_v14, 127  ;;  %v1800_v2 = vld [vmem:[%s3120_s2 + $0x18] sm:$0xff] (!%p240_p9) }
  0x14   : > { %v279_v17 = vand.u32 (!%p240_p9), 255, %v277_v15  ;;  %v2353_v20 = vand.u32 (!%p240_p9), 15, %v278_v16  ;;  %vm2357_vm1 = vcmp.ge.s32.totalorder (!%p240_p9), %v278_v16, 16  ;;  %vm3127_vm14 = vcmp.lt.s32.totalorder (!%p240_p9), %v2349_v14, 113 }
  0x15   : > { %s271_s13 = scalar_select %p270_p10, %s2272_s28, 1 }
  0x16   : > { %v2355_v21 = vand.u32 15, %v279_v17  ;;  %vm3128_vm2 = vcmp.ge.s32.totalorder %v2353_v20, 1  ;;  %vm293_vm7 = vcmp.lt.s32.totalorder %v2353_v20, 15  ;;  %vm2429_vm13 = vcmp.lt.s32.totalorder %v279_v17, 240 }
  0x17   : > { %s1790_s14 = sshll.u32 %s271_s13, 1  ;;  %vm2369_vm6 = vmand %vm2357_vm1, %vm3128_vm2  ;;  %s2210_s13 = smov [#allocation4]  }
  0x18   : > { %s273_s17 = scalar_lea.vmem %s3118_s0, %s1790_s14  ;;  %vm292_vm5 = vcmp.ge.s32.totalorder %v2355_v21, 1  ;;  %vm294_vm9 = vcmp.lt.s32.totalorder %v2355_v21, 15  ;;  %vm2397_vm10 = vmand %vm2357_vm1, %vm293_vm7 }
  0x19   : > { %v2306_v3 = vld [vmem:[%s273_s17] sm:$0x3]  ;;  %vm2450_vm15 = vmand %vm2429_vm13, %vm292_vm5  ;;  %s1789_s17 = sshll.u32 %s267_s16, 1 }
  0x1a   : > { %v303_v4 = vmul.f32 0.01, %v2306_v3 }
  0x1c   : > { %v304_v6 = vmax.f32 %v2306_v3, %v303_v4 }
  0x1e   : > { %v309_v9 = vrot.slane %v304_v6, %v2310_v5  ;;  %440 = vst.msk [vmem:[#allocation2 + $0x4] ss:$8 sm:$0x3] %vm2314_vm0, %v304_v6  ;;  %v313_v10 = vrot.slane %v304_v6, %v312_v7 }
  0x20   : > { %349 = vrot.lane.b32.xlu1 %v309_v9, %s2194_s18  ;;  %316 = vrot.lane.b32.xlu0 %v309_v9, %s2195_s19 }
  0x24   : > { %351 = vrot.lane.b32.xlu1 %v313_v10, %s2194_s18  ;;  %318 = vrot.lane.b32.xlu0 %v313_v10, %s2195_s19 }
  0x28   : > { %381 = vrot.lane.b32.xlu1 %v313_v10, %s2196_s20  ;;  %379 = vrot.lane.b32.xlu0 %v309_v9, %s2196_s20 }
  0x2c   : > { %411 = vrot.lane.b32.xlu1 %v313_v10, %s2197_s21  ;;  %409 = vrot.lane.b32.xlu0 %v309_v9, %s2197_s21 }
  0x30   : > { %444 = vrot.lane.b32.xlu1 %v313_v10, %s2198_s22  ;;  %442 = vrot.lane.b32.xlu0 %v309_v9, %s2198_s22 }
  0x34   : > { %474 = vrot.lane.b32.xlu1 %v313_v10, %s2199_s23  ;;  %472 = vrot.lane.b32.xlu0 %v309_v9, %s2199_s23 }
  0x38   : > { %504 = vrot.lane.b32.xlu1 %v313_v10, %s2200_s29  ;;  %502 = vrot.lane.b32.xlu0 %v309_v9, %s2200_s29 }
  0x3c   : > { %534 = vrot.lane.b32.xlu1 %v313_v10, %s2201_s8  ;;  %532 = vrot.lane.b32.xlu0 %v309_v9, %s2201_s8 }
  0x40   : > { %574 = vperm.xlu0 %1959, %v570_v12   ;;  %579 = vperm.xlu1 %1960, %v571_v13  }
  0x92   : > { %v350_v23 = vpop.permute.xlu1 %349  ;;  %v317_v24 = vpop.permute.xlu0 %316 }
  0x96   : > { %v352_v28 = vpop.permute.xlu1 %351  ;;  %v319_v29 = vpop.permute.xlu0 %318 }
  0x97   : > { %v354_v30 = vsel %vm353_vm3, %v350_v23, %v352_v28  ;;  %v355_v31 = vsel %vm353_vm3, %v352_v28, %v350_v23  ;;  %v321_v32 = vsel %vm320_vm4, %v317_v24, %v319_v29  ;;  %v322_v33 = vsel %vm320_vm4, %v319_v29, %v317_v24 }
  0x98   : > { %v356_v34 = vsel %vm2357_vm1, %v355_v31, 0.0  ;;  %v323_v35 = vsel %vm2369_vm6, %v322_v33, 0.0  ;;  %v324_v36 = vsel %vm292_vm5, %v321_v32, 0.0 }
  0x99   : > { %v360_v37 = vcombine.low %v356_v34, %v354_v30  ;;  %v327_v38 = vcombine.low %v323_v35, %v324_v36 }
  0x9a   : > { %v382_v40 = vpop.permute.xlu1 %381  ;;  %v380_v41 = vpop.permute.xlu0 %379 }
  0x9b   : > { %v367_v42 = vrot.slane %v360_v37, %v2374_v27  ;;  %v334_v43 = vrot.slane %v327_v38, %v2374_v27  ;;  %v384_v44 = vsel %vm383_vm8, %v380_v41, %v382_v40  ;;  %v385_v45 = vsel %vm383_vm8, %v382_v40, %v380_v41 }
  0x9c   : > { %v386_v46 = vsel %vm2397_vm10, %v385_v45, 0.0  ;;  %v387_v47 = vsel %vm294_vm9, %v384_v44, 0.0 }
  0x9d   : > { %v374_v48 = vrot.slane %v367_v42, %v2374_v27  ;;  %v341_v49 = vrot.slane %v334_v43, %v2374_v27  ;;  %v390_v50 = vcombine.low %v386_v46, %v387_v47 }
  0x9e   : > { %v412_v51 = vpop.permute.xlu1 %411  ;;  %v410_v52 = vpop.permute.xlu0 %409 }
  0x9f   : > { %377 = vst.msk [vmem:[#allocation2 + $0x1] ss:$8 sm:$0x3] %vm2314_vm0, %v374_v48  ;;  %347 = vst.msk [vmem:[#allocation2] ss:$8 sm:$0x3] %vm2314_vm0, %v341_v49  ;;  %v397_v53 = vrot.slane %v390_v50, %v2374_v27  ;;  %v414_v54 = vsel %vm413_vm11, %v410_v52, %v412_v51  ;;  %v415_v55 = vsel %vm413_vm11, %v412_v51, %v410_v52 }
  0xa0   : > { %v416_v56 = vsel %vm3128_vm2, %v415_v55, 0.0  ;;  %v417_v57 = vsel %vm292_vm5, %v414_v54, 0.0  ;;  %v2121_v55 = vld [vmem:[%s3119_s1] sm:$0xff]  }
  0xa1   : > { %v404_v58 = vrot.slane %v397_v53, %v2374_v27  ;;  %v420_v59 = vcombine.low %v416_v56, %v417_v57 }
  0xa2   : > { %v445_v60 = vpop.permute.xlu1 %444  ;;  %v443_v61 = vpop.permute.xlu0 %442 }
  0xa3   : > { %407 = vst.msk [vmem:[#allocation2 + $0x2] ss:$8 sm:$0x3] %vm2314_vm0, %v404_v58  ;;  %v427_v63 = vrot.slane %v420_v59, %v2374_v27  ;;  %v447_v0 = vsel %vm3126_vm12, %v443_v61, %v445_v60  ;;  %v448_v1 = vsel %vm3126_vm12, %v445_v60, %v443_v61  ;;  %vm3131_vm12 = vcmp.lt.s32.totalorder %v2349_v14, 112 }
  0xa4   : > { %v449_v4 = vsel %vm293_vm7, %v447_v0, 0.0  ;;  %v450_v6 = vsel %vm294_vm9, %v448_v1, 0.0 }
  0xa5   : > { %v434_v9 = vrot.slane %v427_v63, %v2374_v27  ;;  %v453_v10 = vcombine.low %v449_v4, %v450_v6 }
  0xa6   : > { %v475_v13 = vpop.permute.xlu1 %474  ;;  %v473_v15 = vpop.permute.xlu0 %472 }
  0xa7   : > { %437 = vst.msk [vmem:[#allocation2 + $0x3] ss:$8 sm:$0x3] %vm2314_vm0, %v434_v9  ;;  %v460_v16 = vrot.slane %v453_v10, %v2374_v27  ;;  %v477_v17 = vsel %vm3127_vm14, %v473_v15, %v475_v13  ;;  %v478_v18 = vsel %vm3127_vm14, %v475_v13, %v473_v15  ;;  %vm3129_vm14 = vcmp.lt.s32.totalorder %v2349_v14, 111 }
  0xa8   : > { %v479_v19 = vsel %vm3128_vm2, %v477_v17, 0.0  ;;  %v480_v22 = vsel %vm2450_vm15, %v478_v18, 0.0  ;;  %vm2482_vm2 = vmand %vm2429_vm13, %vm294_vm9 }
  0xa9   : > { %v467_v23 = vrot.slane %v460_v16, %v2374_v27  ;;  %v483_v24 = vcombine.low %v479_v19, %v480_v22 }
  0xaa   : > { %v505_v28 = vpop.permute.xlu1 %504  ;;  %v503_v29 = vpop.permute.xlu0 %502 }
  0xab   : > { %470 = vst.msk [vmem:[#allocation2 + $0x5] ss:$8 sm:$0x3] %vm2314_vm0, %v467_v23  ;;  %v490_v30 = vrot.slane %v483_v24, %v2374_v27  ;;  %v507_v31 = vsel %vm3131_vm12, %v503_v29, %v505_v28  ;;  %v508_v32 = vsel %vm3131_vm12, %v505_v28, %v503_v29  ;;  %v2122_v28 = vld [vmem:[%s3121_s3 + $0x4] ss:$8 sps:$4 sm:$0xff]   ;;  %vm1822_vm12 = vmpackc.low %vm2369_vm6, %vm2369_vm6 }
  0xac   : > { %v510_v33 = vsel %vm2429_vm13, %v508_v32, 0.0  ;;  %v858_v29 = vld [vmem:[%s3122_s4] sm:$0xff]  ;;  %vm1831_vm6 = vmpackc.low %vm2397_vm10, %vm2397_vm10  ;;  %vm3161_vm10 = vcmp.lt.s32.totalorder %v2349_v14, 127 }
  0xad   : > { %v497_v34 = vrot.slane %v490_v30, %v2374_v27  ;;  %v513_v35 = vcombine.low %v507_v31, %v510_v33  ;;  %v859_v30 = vld [vmem:[%s3122_s4 + $0x8] sm:$0xff]  ;;  %v936_v31 = vld [vmem:[%s3124_s6] sm:$0x1] }
  0xae   : > { %v535_v37 = vpop.permute.xlu1 %534  ;;  %v533_v38 = vpop.permute.xlu0 %532 }
  0xaf   : > { %500 = vst.msk [vmem:[#allocation2 + $0x6] ss:$8 sm:$0x3] %vm2314_vm0, %v497_v34  ;;  %v520_v40 = vrot.slane %v513_v35, %v2374_v27  ;;  %v537_v41 = vsel %vm3129_vm14, %v533_v38, %v535_v37  ;;  %v538_v42 = vsel %vm3129_vm14, %v535_v37, %v533_v38  ;;  %vm3130_vm14 = vcmask 130048  }
  0xb0   : > { %v539_v43 = vsel %vm293_vm7, %v537_v41, 0.0  ;;  %v540_v44 = vsel %vm2482_vm2, %v538_v42, 0.0 }
  0xb1   : > { %v527_v45 = vrot.slane %v520_v40, %v2374_v27  ;;  %v543_v46 = vcombine.low %v539_v43, %v540_v44 }
  0xb3   : > { %530 = vst.msk [vmem:[#allocation2 + $0x7] ss:$8 sm:$0x3] %vm2314_vm0, %v527_v45  ;;  %v550_v47 = vrot.slane %v543_v46, %v2374_v27 }
  0xb5   : > { %v557_v48 = vrot.slane %v550_v47, %v2374_v27 }
  0xb7   : > { %560 = vst.msk [vmem:[#allocation2 + $0x10] ss:$8 sm:$0x3] %vm2314_vm0, %v557_v48 }
  0xba   : > { %v565_v49 = vld [vmem:[#allocation2 + $0x8] sm:$0xff]  ;;  %v564_v51 = vld [vmem:[#allocation2] sm:$0xff] }
  0xbe   : > { %v567_v50 = vld [vmem:[#allocation2 + $0x18] sm:$0xff]  ;;  %v566_v52 = vld [vmem:[#allocation2 + $0x10] sm:$0xff] }
  0xbf   : > { %v569_v53 = vpack.c.bf16 %v567_v50, %v565_v49  ;;  %v568_v54 = vpack.c.bf16 %v566_v52, %v564_v51  ;;  %v575_v56 = vpop.permute.xlu0 %574  ;;  %v580_v58 = vpop.permute.xlu1 %579 }
  0xc1   : > { %591 = vmatprep.subr.bf16.mxu1 %v569_v53 }
  0xc2   : > { %592 = vmatpush1.bf16.msra.mxu1 %v568_v54 }
  0xc5   : > { %1792 = vmatmul.mubr.msk.bf16.vlgmr.msra.gmra.mrb[0].mxu1 %vm3130_vm14, %v2121_v55 }
  0xc6   : > { %1795 = vmatprep.mubr.msk.bf16.mxu1 %vm3130_vm14, %v2122_v28  ;;  %vm2564_vm14 = vmpackc.low %vm292_vm5, %vm292_vm5 }
  0xc7   : > { %vm2600_vm5 = vmpackc.low %vm294_vm9, %vm294_vm9 }
 0x198   : > { %v625_v57 = vpop.f32.mrb[0].mxu1 }
 0x199   : > { %v626_v59 = vadd.f32 %v625_v57, %v575_v56  ;;  %v627_v60 = vpop.f32.mrb[1].mxu1 }
 0x19a   : > { %v628_v61 = vadd.f32 %v627_v60, %v575_v56  ;;  %v629_v63 = vpop.f32.mrb[2].mxu1 }
 0x19b   : > { %v634_v0 = vmul.f32 0.01, %v626_v59  ;;  %v630_v1 = vadd.f32 %v629_v63, %v580_v58  ;;  %v631_v4 = vpop.f32.mrb[3].mxu1 }
 0x19c   : > { %v635_v6 = vmul.f32 0.01, %v628_v61  ;;  %v632_v9 = vadd.f32 %v631_v4, %v580_v58 }
 0x19d   : > { %v636_v10 = vmul.f32 0.01, %v630_v1  ;;  %v2508_v15 = vmax.f32 %v626_v59, %v634_v0 }
 0x19e   : > { %v637_v13 = vmul.f32 0.01, %v632_v9  ;;  %v2512_v17 = vmax.f32 %v628_v61, %v635_v6 }
 0x19f   : > { %v2510_v16 = vmax.f32 %v630_v1, %v636_v10 }
 0x1a0   : > { %v2514_v18 = vmax.f32 %v632_v9, %v637_v13 }
 0x1a1   : > { %v1961_v19 = vpack.i.bf16 %v2510_v16, %v2508_v15  ;;  %v738_v24 = vpack.c.bf16 %v2510_v16, %v2508_v15 }
 0x1a2   : > { %v1981_v22 = vpack.i.bf16 %v2514_v18, %v2512_v17  ;;  %v739_v23 = vpack.c.bf16 %v2514_v18, %v2512_v17 }
 0x1a3   : > { %1962 = vrot.lane.b32.xlu1 %v1961_v19, %s2195_s19 }
 0x1a4   : > { %1982 = vrot.lane.b32.xlu0 %v1981_v22, %s2195_s19  ;;  %s2204_s19 = smov 19  }
 0x1a7   : > { %1967 = vrot.lane.b32.xlu1 %v1961_v19, %s2194_s18 }
 0x1a8   : > { %1987 = vrot.lane.b32.xlu0 %v1981_v22, %s2194_s18 }
 0x1ab   : > { %1972 = vrot.lane.b32.xlu1 %v1961_v19, %s2196_s20 }
 0x1ac   : > { %1992 = vrot.lane.b32.xlu0 %v1981_v22, %s2196_s20  ;;  %s2206_s20 = smov 3  }
 0x1af   : > { %1977 = vrot.lane.b32.xlu1 %v1961_v19, %s2197_s21 }
 0x1b0   : > { %1997 = vrot.lane.b32.xlu0 %v1981_v22, %s2197_s21  ;;  %s2207_s21 = smov 125  }
 0x1b3   : > { %2002 = vrot.lane.b32.xlu1 %v1961_v19, %s2198_s22 }
 0x1b4   : > { %2022 = vrot.lane.b32.xlu0 %v1981_v22, %s2198_s22  ;;  %s2208_s22 = smov 115  }
 0x1b7   : > { %2007 = vrot.lane.b32.xlu1 %v1961_v19, %s2199_s23 }
 0x1b8   : > { %2027 = vrot.lane.b32.xlu0 %v1981_v22, %s2199_s23  ;;  %s2209_s23 = smov 109  }
 0x1bb   : > { %2012 = vrot.lane.b32.xlu1 %v1961_v19, %s2200_s29 }
 0x1bc   : > { %2032 = vrot.lane.b32.xlu0 %v1981_v22, %s2200_s29 }
 0x1bf   : > { %2017 = vrot.lane.b32.xlu1 %v1961_v19, %s2201_s8 }
 0x1c0   : > { %2037 = vrot.lane.b32.xlu0 %v1981_v22, %s2201_s8 }
 0x1c3   : > { %862 = vperm.xlu1 %1960, %v858_v29  }
 0x1c4   : > { %867 = vperm.xlu0 %1959, %v859_v30  }
 0x1c7   : > { %939 = vperm.xlu1 %1960, %v936_v31  }
 0x215   : > { %v1963_v32 = vpop.permute.xlu1 %1962 }
 0x216   : > { %v1965_v33 = vunpack.i.h.bf16 %v1963_v32  ;;  %v1964_v34 = vunpack.i.l.bf16 %v1963_v32  ;;  %v1983_v35 = vpop.permute.xlu0 %1982 }
 0x217   : > { %v1985_v37 = vunpack.i.h.bf16 %v1983_v35  ;;  %v1984_v38 = vunpack.i.l.bf16 %v1983_v35 }
 0x219   : > { %v650_v40 = vsel %vm320_vm4, %v1964_v34, %v1984_v38  ;;  %v651_v41 = vsel %vm320_vm4, %v1965_v33, %v1985_v37  ;;  %v652_v42 = vsel %vm320_vm4, %v1984_v38, %v1964_v34  ;;  %v653_v43 = vsel %vm320_vm4, %v1985_v37, %v1965_v33  ;;  %v1968_v44 = vpop.permute.xlu1 %1967  ;;  %vm3137_vm4 = vmpackc.low %vm2357_vm1, %vm2357_vm1 }
 0x21a   : > { %v1820_v46 = vpack.c.bf16 %v651_v41, %v650_v40  ;;  %v1823_v47 = vpack.c.bf16 %v653_v43, %v652_v42  ;;  %v1970_v48 = vunpack.i.h.bf16 %v1968_v44  ;;  %v1969_v49 = vunpack.i.l.bf16 %v1968_v44  ;;  %v1988_v50 = vpop.permute.xlu0 %1987 }
 0x21b   : > { %v1990_v51 = vunpack.i.h.bf16 %v1988_v50  ;;  %v1989_v52 = vunpack.i.l.bf16 %v1988_v50 }
 0x21c   : > { %1821 = vmatprep.subr.msk.bf16.mxu1 %vm2564_vm14, %v1820_v46 }
 0x21d   : > { %v676_v53 = vsel %vm353_vm3, %v1989_v52, %v1969_v49  ;;  %v677_v54 = vsel %vm353_vm3, %v1990_v51, %v1970_v48  ;;  %v1973_v55 = vpop.permute.xlu1 %1972  ;;  %1824 = vmatpush1.bf16.msk.msra.mxu1 %vm1822_vm12, %v1823_v47  ;;  %v674_v26 = vsel %vm353_vm3, %v1969_v49, %v1989_v52  ;;  %v675_v56 = vsel %vm353_vm3, %v1970_v48, %v1990_v51  ;;  %vm3163_vm12 = vmmov %vm3161_vm10 }
 0x21e   : > { %v1826_v57 = vpack.c.bf16 %v677_v54, %v676_v53  ;;  %v1975_v58 = vunpack.i.h.bf16 %v1973_v55  ;;  %v1974_v59 = vunpack.i.l.bf16 %v1973_v55  ;;  %v1993_v60 = vpop.permute.xlu0 %1992  ;;  %v687_v61 = vpack.c.bf16 %v675_v56, %v674_v26 }
 0x21f   : > { %v1995_v63 = vunpack.i.h.bf16 %v1993_v60  ;;  %v1994_v0 = vunpack.i.l.bf16 %v1993_v60 }
 0x220   : > { %884 = vmatprep.subr.bf16.mxu1 %v687_v61 }
 0x221   : > { %v698_v1 = vsel %vm383_vm8, %v1974_v59, %v1994_v0  ;;  %v699_v4 = vsel %vm383_vm8, %v1975_v58, %v1995_v63  ;;  %v700_v6 = vsel %vm383_vm8, %v1994_v0, %v1974_v59  ;;  %v701_v9 = vsel %vm383_vm8, %v1995_v63, %v1975_v58  ;;  %v1978_v10 = vpop.permute.xlu1 %1977  ;;  %1827 = vmatpush1.bf16.msk.msra.mxu1 %vm3137_vm4, %v1826_v57 }
 0x222   : > { %v1829_v19 = vpack.c.bf16 %v699_v4, %v698_v1  ;;  %v1832_v22 = vpack.c.bf16 %v701_v9, %v700_v6  ;;  %v1980_v28 = vunpack.i.h.bf16 %v1978_v10  ;;  %v1979_v29 = vunpack.i.l.bf16 %v1978_v10  ;;  %v1998_v30 = vpop.permute.xlu0 %1997 }
 0x223   : > { %v2000_v31 = vunpack.i.h.bf16 %v1998_v30  ;;  %v1999_v32 = vunpack.i.l.bf16 %v1998_v30  ;;  %vm3158_vm8 = vcmp.ge.s32.totalorder %v2353_v20, 1 }
 0x224   : > { %1830 = vmatprep.subr.msk.bf16.mxu1 %vm2600_vm5, %v1829_v19  ;;  %vm2620_vm9 = vmpackc.low %vm3158_vm8, %vm3158_vm8 }
 0x225   : > { %v722_v33 = vsel %vm413_vm11, %v1979_v29, %v1999_v32  ;;  %v723_v34 = vsel %vm413_vm11, %v1980_v28, %v2000_v31  ;;  %v724_v39 = vsel %vm413_vm11, %v1999_v32, %v1979_v29  ;;  %v725_v35 = vsel %vm413_vm11, %v2000_v31, %v1980_v28  ;;  %v2003_v37 = vpop.permute.xlu1 %2002  ;;  %1833 = vmatpush1.bf16.msk.msra.mxu1 %vm1831_vm6, %v1832_v22  ;;  %vm3162_vm11 = vmmov %vm3161_vm10 }
 0x226   : > { %v1835_v38 = vpack.c.bf16 %v723_v34, %v722_v33  ;;  %v1838_v40 = vpack.c.bf16 %v725_v35, %v724_v39  ;;  %v2005_v41 = vunpack.i.h.bf16 %v2003_v37  ;;  %v2004_v42 = vunpack.i.l.bf16 %v2003_v37  ;;  %v2023_v43 = vpop.permute.xlu0 %2022 }
 0x227   : > { %v2025_v46 = vunpack.i.h.bf16 %v2023_v43  ;;  %v2024_v47 = vunpack.i.l.bf16 %v2023_v43  ;;  %vm3165_vm6 = vcmp.lt.s32.totalorder %v2349_v14, 113 }
 0x228   : > { %1836 = vmatprep.subr.msk.bf16.mxu1 %vm2564_vm14, %v1835_v38  ;;  %vm3164_vm14 = vmmov %vm3161_vm10  ;;  %v2124_v38 = vld [vmem:[%s3121_s3] ss:$8 sps:$4 sm:$0xff]  }
 0x229   : > { %v752_v48 = vsel %vm3161_vm10, %v2024_v47, %v2004_v42  ;;  %v753_v49 = vsel %vm3162_vm11, %v2025_v46, %v2005_v41  ;;  %v2008_v50 = vpop.permute.xlu1 %2007  ;;  %1839 = vmatpush1.bf16.msk.msra.mxu1 %vm2620_vm9, %v1838_v40  ;;  %v750_v55 = vsel %vm3163_vm12, %v2004_v42, %v2024_v47  ;;  %v751_v26 = vsel %vm3164_vm14, %v2005_v41, %v2025_v46  ;;  %vm3166_vm8 = vmmov %vm3165_vm6 }
 0x22a   : > { %v2010_v51 = vunpack.i.h.bf16 %v2008_v50  ;;  %v2009_v52 = vunpack.i.l.bf16 %v2008_v50  ;;  %v2028_v53 = vpop.permute.xlu0 %2027  ;;  %890 = vmatprep.subr.bf16.mxu1 %v739_v23  ;;  %v1841_v56 = vpack.c.bf16 %v753_v49, %v752_v48  ;;  %vm2651_vm10 = vmpackc.low %vm293_vm7, %vm293_vm7  ;;  %v1844_v61 = vpack.c.bf16 %v751_v26, %v750_v55 }
 0x22b   : > { %v2030_v54 = vunpack.i.h.bf16 %v2028_v53  ;;  %v2029_v45 = vunpack.i.l.bf16 %v2028_v53  ;;  %vm1846_vm11 = vmpackc.low %vm2450_vm15, %vm2450_vm15 }
 0x22c   : > { %vm3169_vm12 = vmmov %vm3165_vm6 }
 0x22d   : > { %v776_v57 = vsel %vm3165_vm6, %v2029_v45, %v2009_v52  ;;  %v777_v58 = vsel %vm3166_vm8, %v2030_v54, %v2010_v51  ;;  %v2013_v59 = vpop.permute.xlu1 %2012  ;;  %891 = vmatpush1.bf16.msra.mxu1 %v738_v24  ;;  %v774_v15 = vsel %vm3169_vm12, %v2009_v52, %v2029_v45  ;;  %vm3170_vm14 = vmmov %vm3165_vm6  ;;  %vm3175_vm12 = vcmp.lt.s32.totalorder %v2349_v14, 111 }
 0x22e   : > { %v2015_v17 = vunpack.i.h.bf16 %v2013_v59  ;;  %v2014_v18 = vunpack.i.l.bf16 %v2013_v59  ;;  %v2033_v23 = vpop.permute.xlu0 %2032  ;;  %1842 = vmatprep.subr.msk.bf16.mxu1 %vm2600_vm5, %v1841_v56  ;;  %v775_v16 = vsel %vm3170_vm14, %v2010_v51, %v2030_v54  ;;  %v1847_v24 = vpack.c.bf16 %v777_v58, %v776_v57  ;;  %vm3132_vm15 = vmpackc.low %vm2429_vm13, %vm2429_vm13  ;;  %v933_v58 = vld [vmem:[%s3123_s5] sm:$0x1] }
 0x22f   : > { %v2035_v63 = vunpack.i.h.bf16 %v2033_v23  ;;  %v2034_v0 = vunpack.i.l.bf16 %v2033_v23  ;;  %vm3171_vm5 = vcmp.lt.s32.totalorder %v2349_v14, 112  ;;  %v1850_v13 = vpack.c.bf16 %v775_v16, %v774_v15  ;;  %vm3176_vm14 = vmmov %vm3175_vm12 }
 0x230   : > { %vm3172_vm7 = vmmov %vm3171_vm5 }
 0x231   : > { %v800_v1 = vsel %vm3171_vm5, %v2034_v0, %v2014_v18  ;;  %v801_v4 = vsel %vm3172_vm7, %v2035_v63, %v2015_v17  ;;  %v2018_v6 = vpop.permute.xlu1 %2017  ;;  %1845 = vmatpush1.bf16.msk.msra.mxu1 %vm2651_vm10, %v1844_v61  ;;  %vm3173_vm6 = vmmov %vm3171_vm5 }
 0x232   : > { %v2020_v12 = vunpack.i.h.bf16 %v2018_v6  ;;  %v2019_v9 = vunpack.i.l.bf16 %v2018_v6  ;;  %v2038_v10 = vpop.permute.xlu0 %2037  ;;  %1848 = vmatprep.subr.msk.bf16.mxu1 %vm1846_vm11, %v1847_v24  ;;  %v798_v28 = vsel %vm3173_vm6, %v2014_v18, %v2034_v0  ;;  %vm3174_vm8 = vmmov %vm3171_vm5  ;;  %v1853_v30 = vpack.c.bf16 %v801_v4, %v800_v1 }
 0x233   : > { %v2040_v19 = vunpack.i.h.bf16 %v2038_v10  ;;  %v2039_v22 = vunpack.i.l.bf16 %v2038_v10  ;;  %v799_v29 = vsel %vm3174_vm8, %v2015_v17, %v2035_v63  ;;  %vm1855_vm11 = vmpackc.low %vm2482_vm2, %vm2482_vm2  ;;  %vm3179_vm2 = vcmask 130048  }
 0x234   : > { %v810_v33 = vpack.c.bf16 %v799_v29, %v798_v28  ;;  %vm3177_vm5 = vmmov %vm3175_vm12  ;;  %vm1010_vm6 = vcmp.ge.s32.totalorder %v2355_v21, 3 }
 0x235   : > { %v824_v31 = vsel %vm3175_vm12, %v2039_v22, %v2019_v9  ;;  %v825_v32 = vsel %vm3176_vm14, %v2040_v19, %v2020_v12  ;;  %1851 = vmatpush1.bf16.msk.msra.mxu1 %vm2620_vm9, %v1850_v13  ;;  %v822_v34 = vsel %vm3177_vm5, %v2019_v9, %v2039_v22  ;;  %vm3178_vm7 = vmmov %vm3177_vm5  ;;  %vm3136_vm9 = vcmp.ge.s32.totalorder %v2353_v20, 3 }
 0x236   : > { %1854 = vmatprep.subr.msk.bf16.mxu1 %vm3132_vm15, %v1853_v30  ;;  %v823_v39 = vsel %vm3178_vm7, %v2020_v12, %v2040_v19  ;;  %v1856_v35 = vpack.c.bf16 %v825_v32, %v824_v31  ;;  %vm2746_vm8 = vmand %vm2357_vm1, %vm3136_vm9  ;;  %vm1011_vm12 = vcmp.lt.s32.totalorder %v2353_v20, 13  ;;  %vm1095_vm14 = vcmp.lt.s32.totalorder %v2349_v14, 13 }
 0x237   : > { %v1859_v37 = vpack.c.bf16 %v823_v39, %v822_v34  ;;  %vm2773_vm5 = vmand %vm2357_vm1, %vm1011_vm12  ;;  %vm3133_vm7 = vcmp.lt.s32.totalorder %v2349_v14, 3  ;;  %vm3135_vm15 = vcmp.lt.s32.totalorder %v2349_v14, 115 }
 0x239   : > { %897 = vmatpush1.bf16.msra.mxu1 %v810_v33 }
 0x23a   : > { %1857 = vmatprep.subr.msk.bf16.mxu1 %vm1855_vm11, %v1856_v35  ;;  %vm1012_vm11 = vcmp.lt.s32.totalorder %v2355_v21, 13 }
 0x23b   : > { %vm2851_vm4 = vmand %vm2429_vm13, %vm1012_vm11 }
 0x23d   : > { %1860 = vmatpush1.bf16.msk.msra.mxu1 %vm2651_vm10, %v1859_v37  ;;  %vm1038_vm10 = vcmp.lt.s32.totalorder %v2349_v14, 19 }
 0x240   : > { %915 = vmatmul.mubr.bf16.vlgmr.msra.gmra.mrb[4].mxu1 %v2124_v38 }
 0x241   : > { %1682 = vmatprep.mubr.bf16.mxu1 %v2202_v11 }
 0x242   : > { %v863_v36 = vpop.permute.xlu1 %862 }
 0x243   : > { %v868_v43 = vpop.permute.xlu0 %867 }
 0x246   : > { %v940_v59 = vpop.permute.xlu1 %939 }
 0x247   : > { %v945_v17 = vrot.slane %v940_v59, %v2310_v5 }
 0x313   : > { %v916_v40 = vpop.f32.mrb[4].mxu1 }
 0x314   : > { %v917_v41 = vadd.f32 %v916_v40, %v863_v36  ;;  %v918_v42 = vpop.f32.mrb[5].mxu1 }
 0x315   : > { %v919_v44 = vadd.f32 %v918_v42, %v863_v36  ;;  %v920_v46 = vpop.f32.mrb[6].mxu1 }
 0x316   : > { %v925_v47 = vmul.f32 0.01, %v917_v41  ;;  %v921_v48 = vadd.f32 %v920_v46, %v868_v43  ;;  %v922_v49 = vpop.f32.mrb[7].mxu1 }
 0x317   : > { %v926_v50 = vmul.f32 0.01, %v919_v44  ;;  %v923_v51 = vadd.f32 %v922_v49, %v868_v43 }
 0x318   : > { %v927_v52 = vmul.f32 0.01, %v921_v48  ;;  %v929_v54 = vmax.f32 %v917_v41, %v925_v47 }
 0x319   : > { %v928_v53 = vmul.f32 0.01, %v923_v51  ;;  %v930_v55 = vmax.f32 %v919_v44, %v926_v50 }
 0x31a   : > { %v931_v45 = vmax.f32 %v921_v48, %v927_v52 }
 0x31b   : > { %v932_v26 = vmax.f32 %v923_v51, %v928_v53 }
 0x31c   : > { %v934_v56 = vpack.c.bf16 %v931_v45, %v929_v54 }
 0x31d   : > { %v935_v57 = vpack.c.bf16 %v932_v26, %v930_v55 }
 0x31f   : > { %949 = vmatprep.subr.bf16.mxu0 %v935_v57 }
 0x320   : > { %950 = vmatpush1.bf16.msra.mxu0 %v934_v56 }
 0x323   : > { %1796 = vmatmul.mubr.msk.bf16.vlgmr.msra.gmra.mrb[0].mxu0 %vm3179_vm2, %v933_v58  ;;  %vm3134_vm2 = vcmp.lt.s32.totalorder %v2349_v14, 125 }
 0x324   : > { %1328 = vmatprep.mubr.bf16.mxu0 %v2202_v11 }
 0x3f6   : > { %v983_v18 = vpop.f32.mrb[0].mxu0 }
 0x3f7   : > { %v984_v23 = vadd.f32 %v983_v18, %v945_v17  ;;  %v985_v60 = vpop.f32.mrb[1].mxu0 }
 0x3f8   : > { %v986_v61 = vadd.f32 %v985_v60, %v945_v17  ;;  %v987_v63 = vpop.f32.mrb[2].mxu0 }
 0x3f9   : > { %v988_v0 = vpop.f32.mrb[3].mxu0 }
 0x3fa   : > { %v992_v15 = vcombine.low %v984_v23, %v986_v61 }
 0x3fc   : > { %v999_v16 = vrot.slane %v992_v15, %v2374_v27 }
 0x3fe   : > { %v1006_v24 = vrot.slane %v999_v16, %v2374_v27 }
 0x400   : > { %v2708_v1 = vadd.f32 %v1006_v24, %v2306_v3  ;;  %v1799_v3 = vld [vmem:[%s3120_s2 + $0x10] sm:$0xff] }
 0x402   : > { %v1021_v4 = vmul.f32 0.01, %v2708_v1 }
 0x404   : > { %v1022_v11 = vmax.f32 %v2708_v1, %v1021_v4 }
 0x406   : > { %v1027_v6 = vrot.slane %v1022_v11, %v2310_v5  ;;  %v1031_v12 = vrot.slane %v1022_v11, %v312_v7  ;;  %1149 = vst.msk [vmem:[#allocation2 + $0x4] ss:$8 sm:$0x3] %vm2314_vm0, %v1022_v11 }
 0x408   : > { %1036 = vrot.lane.b32.xlu1 %v1031_v12, %s2204_s19  ;;  %1034 = vrot.lane.b32.xlu0 %v1027_v6, %s2204_s19 }
 0x40c   : > { %1065 = vrot.lane.b32.xlu1 %v1031_v12, %s2194_s18  ;;  %1063 = vrot.lane.b32.xlu0 %v1027_v6, %s2194_s18 }
 0x410   : > { %1093 = vrot.lane.b32.xlu1 %v1031_v12, %s2205_s9  ;;  %1091 = vrot.lane.b32.xlu0 %v1027_v6, %s2205_s9 }
 0x414   : > { %1122 = vrot.lane.b32.xlu1 %v1031_v12, %s2206_s20  ;;  %1120 = vrot.lane.b32.xlu0 %v1027_v6, %s2206_s20 }
 0x418   : > { %1153 = vrot.lane.b32.xlu1 %v1031_v12, %s2207_s21  ;;  %1151 = vrot.lane.b32.xlu0 %v1027_v6, %s2207_s21 }
 0x41c   : > { %1182 = vrot.lane.b32.xlu1 %v1031_v12, %s2208_s22  ;;  %1180 = vrot.lane.b32.xlu0 %v1027_v6, %s2208_s22 }
 0x420   : > { %1211 = vrot.lane.b32.xlu1 %v1031_v12, %s2200_s29  ;;  %1209 = vrot.lane.b32.xlu0 %v1027_v6, %s2200_s29 }
 0x424   : > { %1239 = vrot.lane.b32.xlu1 %v1031_v12, %s2209_s23  ;;  %1237 = vrot.lane.b32.xlu0 %v1027_v6, %s2209_s23 }
 0x428   : > { %1285 = vperm.xlu1 %1960, %v1800_v2   ;;  %1280 = vperm.xlu0 %1959, %v1799_v3  }
 0x47a   : > { %v1037_v9 = vpop.permute.xlu1 %1036  ;;  %v1035_v10 = vpop.permute.xlu0 %1034 }
 0x47b   : > { %v1039_v13 = vsel %vm1038_vm10, %v1035_v10, %v1037_v9  ;;  %v1040_v19 = vsel %vm1038_vm10, %v1037_v9, %v1035_v10 }
 0x47c   : > { %v1041_v22 = vsel %vm2746_vm8, %v1040_v19, 0.0  ;;  %v1042_v28 = vsel %vm1010_vm6, %v1039_v13, 0.0 }
 0x47d   : > { %v1045_v29 = vcombine.low %v1041_v22, %v1042_v28 }
 0x47e   : > { %v1066_v30 = vpop.permute.xlu1 %1065  ;;  %v1064_v31 = vpop.permute.xlu0 %1063 }
 0x47f   : > { %v1052_v32 = vrot.slane %v1045_v29, %v2374_v27  ;;  %v1067_v33 = vsel %vm353_vm3, %v1064_v31, %v1066_v30  ;;  %v1068_v34 = vsel %vm353_vm3, %v1066_v30, %v1064_v31 }
 0x480   : > { %v1069_v39 = vsel %vm2357_vm1, %v1068_v34, 0.0 }
 0x481   : > { %v1059_v35 = vrot.slane %v1052_v32, %v2374_v27  ;;  %v1073_v37 = vcombine.low %v1069_v39, %v1067_v33 }
 0x482   : > { %v1094_v36 = vpop.permute.xlu1 %1093  ;;  %v1092_v40 = vpop.permute.xlu0 %1091 }
 0x483   : > { %1061 = vst.msk [vmem:[#allocation2] ss:$8 sm:$0x3] %vm2314_vm0, %v1059_v35  ;;  %v1080_v41 = vrot.slane %v1073_v37, %v2374_v27  ;;  %v1096_v42 = vsel %vm1095_vm14, %v1092_v40, %v1094_v36  ;;  %v1097_v43 = vsel %vm1095_vm14, %v1094_v36, %v1092_v40 }
 0x484   : > { %v1098_v44 = vsel %vm2773_vm5, %v1097_v43, 0.0  ;;  %v1099_v46 = vsel %vm1012_vm11, %v1096_v42, 0.0 }
 0x485   : > { %v1087_v47 = vrot.slane %v1080_v41, %v2374_v27  ;;  %v1102_v48 = vcombine.low %v1098_v44, %v1099_v46 }
 0x486   : > { %v1123_v49 = vpop.permute.xlu1 %1122  ;;  %v1121_v50 = vpop.permute.xlu0 %1120 }
 0x487   : > { %1089 = vst.msk [vmem:[#allocation2 + $0x1] ss:$8 sm:$0x3] %vm2314_vm0, %v1087_v47  ;;  %v1109_v51 = vrot.slane %v1102_v48, %v2374_v27  ;;  %v1125_v52 = vsel %vm3133_vm7, %v1121_v50, %v1123_v49  ;;  %v1126_v53 = vsel %vm3133_vm7, %v1123_v49, %v1121_v50  ;;  %vm2820_vm7 = vmand %vm2429_vm13, %vm1010_vm6  ;;  %v2125_v50 = vld [vmem:[%s3119_s1 + $0x8] sm:$0xff]  }
 0x488   : > { %v1127_v54 = vsel %vm3136_vm9, %v1126_v53, 0.0  ;;  %v1128_v45 = vsel %vm1010_vm6, %v1125_v52, 0.0 }
 0x489   : > { %v1116_v55 = vrot.slane %v1109_v51, %v2374_v27  ;;  %v1131_v26 = vcombine.low %v1127_v54, %v1128_v45 }
 0x48a   : > { %v1154_v56 = vpop.permute.xlu1 %1153  ;;  %v1152_v57 = vpop.permute.xlu0 %1151 }
 0x48b   : > { %1118 = vst.msk [vmem:[#allocation2 + $0x2] ss:$8 sm:$0x3] %vm2314_vm0, %v1116_v55  ;;  %v1138_v58 = vrot.slane %v1131_v26, %v2374_v27  ;;  %v1156_v59 = vsel %vm3134_vm2, %v1152_v57, %v1154_v56  ;;  %v1157_v17 = vsel %vm3134_vm2, %v1154_v56, %v1152_v57  ;;  %vm3186_vm2 = vcmp.lt.s32.totalorder %v2349_v14, 112 }
 0x48c   : > { %v1158_v18 = vsel %vm1011_vm12, %v1156_v59, 0.0  ;;  %v1159_v23 = vsel %vm1012_vm11, %v1157_v17, 0.0 }
 0x48d   : > { %v1145_v60 = vrot.slane %v1138_v58, %v2374_v27  ;;  %v1162_v61 = vcombine.low %v1158_v18, %v1159_v23 }
 0x48e   : > { %v1183_v0 = vpop.permute.xlu1 %1182  ;;  %v1181_v15 = vpop.permute.xlu0 %1180 }
 0x48f   : > { %1147 = vst.msk [vmem:[#allocation2 + $0x3] ss:$8 sm:$0x3] %vm2314_vm0, %v1145_v60  ;;  %v1169_v16 = vrot.slane %v1162_v61, %v2374_v27  ;;  %v1185_v24 = vsel %vm3135_vm15, %v1181_v15, %v1183_v0  ;;  %v1186_v4 = vsel %vm3135_vm15, %v1183_v0, %v1181_v15  ;;  %vm3187_vm15 = vmmov %vm3186_vm2 }
 0x490   : > { %v1187_v11 = vsel %vm3136_vm9, %v1185_v24, 0.0  ;;  %v1188_v6 = vsel %vm2820_vm7, %v1186_v4, 0.0  ;;  %vm1241_vm9 = vcmp.lt.s32.totalorder %v2349_v14, 109 }
 0x491   : > { %v1176_v12 = vrot.slane %v1169_v16, %v2374_v27  ;;  %v1191_v2 = vcombine.low %v1187_v11, %v1188_v6  ;;  %v2126_v6 = vld [vmem:[%s3121_s3 + $0x14] ss:$8 sps:$4 sm:$0xff]  }
 0x492   : > { %v1212_v3 = vpop.permute.xlu1 %1211  ;;  %v1210_v9 = vpop.permute.xlu0 %1209 }
 0x493   : > { %1178 = vst.msk [vmem:[#allocation2 + $0x5] ss:$8 sm:$0x3] %vm2314_vm0, %v1176_v12  ;;  %v1198_v10 = vrot.slane %v1191_v2, %v2374_v27  ;;  %v1213_v13 = vsel %vm3186_vm2, %v1210_v9, %v1212_v3  ;;  %v1214_v19 = vsel %vm3187_vm15, %v1212_v3, %v1210_v9  ;;  %vm3190_vm15 = vcmask 130048   ;;  %v1805_v12 = vld [vmem:[%s3122_s4 + $0x10] sm:$0xff]  ;;  %v1806_v2 = vld [vmem:[%s3122_s4 + $0x18] sm:$0xff] }
 0x494   : > { %v1216_v22 = vsel %vm2429_vm13, %v1214_v19, 0.0  ;;  %vm3191_vm2 = vmmov %vm3190_vm15  ;;  %v1811_v3 = vld [vmem:[%s3124_s6 + $0x1] sm:$0x1] }
 0x495   : > { %v1205_v28 = vrot.slane %v1198_v10, %v2374_v27  ;;  %v1219_v29 = vcombine.low %v1213_v13, %v1216_v22 }
 0x496   : > { %v1240_v31 = vpop.permute.xlu1 %1239  ;;  %v1238_v32 = vpop.permute.xlu0 %1237 }
 0x497   : > { %1207 = vst.msk [vmem:[#allocation2 + $0x6] ss:$8 sm:$0x3] %vm2314_vm0, %v1205_v28  ;;  %v1226_v33 = vrot.slane %v1219_v29, %v2374_v27  ;;  %v1242_v34 = vsel %vm1241_vm9, %v1238_v32, %v1240_v31  ;;  %v1243_v39 = vsel %vm1241_vm9, %v1240_v31, %v1238_v32 }
 0x498   : > { %v1244_v35 = vsel %vm1011_vm12, %v1242_v34, 0.0  ;;  %v1245_v37 = vsel %vm2851_vm4, %v1243_v39, 0.0 }
 0x499   : > { %v1233_v36 = vrot.slane %v1226_v33, %v2374_v27  ;;  %v1248_v40 = vcombine.low %v1244_v35, %v1245_v37 }
 0x49b   : > { %1235 = vst.msk [vmem:[#allocation2 + $0x7] ss:$8 sm:$0x3] %vm2314_vm0, %v1233_v36  ;;  %v1255_v41 = vrot.slane %v1248_v40, %v2374_v27 }
 0x49d   : > { %v1262_v42 = vrot.slane %v1255_v41, %v2374_v27 }
 0x49f   : > { %1264 = vst.msk [vmem:[#allocation2 + $0x10] ss:$8 sm:$0x3] %vm2314_vm0, %v1262_v42 }
 0x4a2   : > { %v1270_v43 = vld [vmem:[#allocation2 + $0x8] sm:$0xff]  ;;  %v1269_v46 = vld [vmem:[#allocation2] sm:$0xff] }
 0x4a6   : > { %v1272_v44 = vld [vmem:[#allocation2 + $0x18] sm:$0xff]  ;;  %v1271_v47 = vld [vmem:[#allocation2 + $0x10] sm:$0xff] }
 0x4a7   : > { %v1274_v48 = vpack.c.bf16 %v1272_v44, %v1270_v43  ;;  %v1273_v49 = vpack.c.bf16 %v1271_v47, %v1269_v46  ;;  %v1281_v51 = vpop.permute.xlu0 %1280  ;;  %v1286_v45 = vpop.permute.xlu1 %1285 }
 0x4a9   : > { %1296 = vmatprep.subr.bf16.mxu0 %v1274_v48 }
 0x4aa   : > { %1297 = vmatpush1.bf16.msra.mxu0 %v1273_v49 }
 0x4ad   : > { %1802 = vmatmul.mubr.msk.bf16.vlgmr.msra.gmra.mrb[4].mxu0 %vm3190_vm15, %v2125_v50  ;;  %vm2933_vm15 = vmpackc.low %vm1010_vm6, %vm1010_vm6 }
 0x4ae   : > { %1809 = vmatprep.mubr.msk.bf16.mxu0 %vm3191_vm2, %v2126_v6  ;;  %vm1864_vm2 = vmpackc.low %vm2746_vm8, %vm2746_vm8 }
 0x4af   : > { %vm1873_vm6 = vmpackc.low %vm2773_vm5, %vm2773_vm5  ;;  %vm3201_vm5 = vcmp.ge.s32.totalorder %v2353_v20, 3 }
 0x580   : > { %v1330_v52 = vpop.f32.mrb[4].mxu0 }
 0x581   : > { %v1331_v53 = vadd.f32 %v1330_v52, %v1281_v51  ;;  %v1332_v54 = vpop.f32.mrb[5].mxu0 }
 0x582   : > { %v1333_v55 = vadd.f32 %v1332_v54, %v1281_v51  ;;  %v1334_v26 = vpop.f32.mrb[6].mxu0 }
 0x583   : > { %v1339_v56 = vmul.f32 0.01, %v1331_v53  ;;  %v1335_v57 = vadd.f32 %v1334_v26, %v1286_v45  ;;  %v1336_v58 = vpop.f32.mrb[7].mxu0 }
 0x584   : > { %v1340_v59 = vmul.f32 0.01, %v1333_v55  ;;  %v1337_v17 = vadd.f32 %v1336_v58, %v1286_v45 }
 0x585   : > { %v1341_v18 = vmul.f32 0.01, %v1335_v57  ;;  %v2877_v60 = vmax.f32 %v1331_v53, %v1339_v56 }
 0x586   : > { %v1342_v23 = vmul.f32 0.01, %v1337_v17  ;;  %v2881_v0 = vmax.f32 %v1333_v55, %v1340_v59 }
 0x587   : > { %v2879_v61 = vmax.f32 %v1335_v57, %v1341_v18 }
 0x588   : > { %v2883_v15 = vmax.f32 %v1337_v17, %v1342_v23 }
 0x589   : > { %v2041_v16 = vpack.i.bf16 %v2879_v61, %v2877_v60  ;;  %v1439_v11 = vpack.c.bf16 %v2879_v61, %v2877_v60 }
 0x58a   : > { %v2061_v24 = vpack.i.bf16 %v2883_v15, %v2881_v0  ;;  %v1440_v4 = vpack.c.bf16 %v2883_v15, %v2881_v0 }
 0x58b   : > { %2042 = vrot.lane.b32.xlu0 %v2041_v16, %s2204_s19 }
 0x58c   : > { %2062 = vrot.lane.b32.xlu1 %v2061_v24, %s2204_s19  ;;  %s269_s19 = scalar_lea.vmem [#allocation4], %s1789_s17 }
 0x58f   : > { %2047 = vrot.lane.b32.xlu0 %v2041_v16, %s2194_s18 }
 0x590   : > { %2067 = vrot.lane.b32.xlu1 %v2061_v24, %s2194_s18  ;;  %s1818_s18 = sshll.u32 %s2272_s28, 5  ;;  %s1712_s28 = scalar_lea.sflag [#allocation5], %s267_s16 }
 0x593   : > { %2052 = vrot.lane.b32.xlu0 %v2041_v16, %s2205_s9 }
 0x594   : > { %2072 = vrot.lane.b32.xlu1 %v2061_v24, %s2205_s9  ;;  %s1726_s9 = sshll.u32 %s269_s19, 4  ;;  %s3076_s9 = int_to_ptr.vmem [resolvable:$true] %s1726_s9 }
 0x597   : > { %2057 = vrot.lane.b32.xlu0 %v2041_v16, %s2206_s20 }
 0x598   : > { %2077 = vrot.lane.b32.xlu1 %v2061_v24, %s2206_s20 }
 0x59b   : > { %2082 = vrot.lane.b32.xlu0 %v2041_v16, %s2207_s21 }
 0x59c   : > { %2102 = vrot.lane.b32.xlu1 %v2061_v24, %s2207_s21 }
 0x59f   : > { %2087 = vrot.lane.b32.xlu0 %v2041_v16, %s2208_s22 }
 0x5a0   : > { %2107 = vrot.lane.b32.xlu1 %v2061_v24, %s2208_s22  ;;  %s3074_s22 = scalar_lea.hbm %s3125_s7, %s1818_s18 }
 0x5a3   : > { %2092 = vrot.lane.b32.xlu0 %v2041_v16, %s2200_s29 }
 0x5a4   : > { %2112 = vrot.lane.b32.xlu1 %v2061_v24, %s2200_s29  ;;  %s2129_s29 = scalar_lea.vmem %s3076_s9, 32 }
 0x5a5   : > { %p2130_p11 = scmp.ne.s32.totalorder %s3076_s9, %s2129_s29 }
 0x5a7   : > { %2097 = vrot.lane.b32.xlu0 %v2041_v16, %s2209_s23  ;;  %p2131_p12 = pnand %p2130_p11, %p2289_p5 }
 0x5a8   : > { %2117 = vrot.lane.b32.xlu1 %v2061_v24, %s2209_s23  ;;  %s2133_s23 = sshll.u32 %s2210_s13, 4  ;;  %s2134_s23 = int_to_ptr.vmem [resolvable:$false] %s2133_s23 }
 0x5a9   : > { %p2132_p13 = pneg %p2131_p12  ;;  %s2135_s14 = scalar_lea.vmem %s2134_s23, 64 }
 0x5aa   : > { %p2136_p0 = scmp.lt.s32.totalorder %s3076_s9, %s2134_s23  ;;  %p2137_p1 = scmp.lt.s32.totalorder %s2135_s14, %s2129_s29 }
 0x5ab   : > { %1561 = vperm.xlu0 %1959, %v1805_v12  }
 0x5ac   : > { %1566 = vperm.xlu1 %1960, %v1806_v2   ;;  %p2138_p2 = por %p2137_p1, %p2136_p0 }
 0x5ae   : > { %p2139_p3 = pnand %p2138_p2, %p2132_p13 }
 0x5af   : > { %1640 = vperm.xlu0 %1959, %v1811_v3  }
 0x5fd   : > { %v2043_v9 = vpop.permute.xlu0 %2042 }
 0x5fe   : > { %v2045_v10 = vunpack.i.h.bf16 %v2043_v9  ;;  %v2044_v13 = vunpack.i.l.bf16 %v2043_v9  ;;  %v2063_v19 = vpop.permute.xlu1 %2062 }
 0x5ff   : > { %v2065_v22 = vunpack.i.h.bf16 %v2063_v19  ;;  %v2064_v28 = vunpack.i.l.bf16 %v2063_v19 }
 0x601   : > { %v1355_v29 = vsel %vm1038_vm10, %v2044_v13, %v2064_v28  ;;  %v1356_v31 = vsel %vm1038_vm10, %v2045_v10, %v2065_v22  ;;  %v1357_v32 = vsel %vm1038_vm10, %v2064_v28, %v2044_v13  ;;  %v1358_v33 = vsel %vm1038_vm10, %v2065_v22, %v2045_v10  ;;  %v2048_v34 = vpop.permute.xlu0 %2047  ;;  %vm2966_vm10 = vmpackc.low %vm1012_vm11, %vm1012_vm11 }
 0x602   : > { %v1862_v35 = vpack.c.bf16 %v1356_v31, %v1355_v29  ;;  %v1865_v37 = vpack.c.bf16 %v1358_v33, %v1357_v32  ;;  %v2050_v36 = vunpack.i.h.bf16 %v2048_v34  ;;  %v2049_v40 = vunpack.i.l.bf16 %v2048_v34  ;;  %v2068_v41 = vpop.permute.xlu1 %2067 }
 0x603   : > { %v2070_v42 = vunpack.i.h.bf16 %v2068_v41  ;;  %v2069_v43 = vunpack.i.l.bf16 %v2068_v41 }
 0x604   : > { %1863 = vmatprep.subr.msk.bf16.mxu0 %vm2933_vm15, %v1862_v35 }
 0x605   : > { %v1381_v44 = vsel %vm353_vm3, %v2069_v43, %v2049_v40  ;;  %v1382_v46 = vsel %vm353_vm3, %v2070_v42, %v2050_v36  ;;  %v2053_v47 = vpop.permute.xlu0 %2052  ;;  %1866 = vmatpush1.bf16.msk.msra.mxu0 %vm1864_vm2, %v1865_v37  ;;  %v1379_v7 = vsel %vm353_vm3, %v2049_v40, %v2069_v43  ;;  %v1380_v48 = vsel %vm353_vm3, %v2050_v36, %v2070_v42  ;;  %vm3194_vm3 = vmpackc.low %vm2357_vm1, %vm2357_vm1 }
 0x606   : > { %v1868_v49 = vpack.c.bf16 %v1382_v46, %v1381_v44  ;;  %v2055_v50 = vunpack.i.h.bf16 %v2053_v47  ;;  %v2054_v51 = vunpack.i.l.bf16 %v2053_v47  ;;  %v2073_v52 = vpop.permute.xlu1 %2072  ;;  %v1388_v53 = vpack.c.bf16 %v1380_v48, %v1379_v7  ;;  %vm2986_vm2 = vmpackc.low %vm3201_vm5, %vm3201_vm5 }
 0x607   : > { %v2075_v54 = vunpack.i.h.bf16 %v2073_v52  ;;  %v2074_v45 = vunpack.i.l.bf16 %v2073_v52  ;;  %vm3197_vm1 = vcmp.lt.s32.totalorder %v2349_v14, 3  ;;  %vm1888_vm5 = vmpackc.low %vm2820_vm7, %vm2820_vm7 }
 0x608   : > { %1583 = vmatprep.subr.bf16.mxu0 %v1388_v53  ;;  %vm3198_vm8 = vmmov %vm3197_vm1 }
 0x609   : > { %v1399_v55 = vsel %vm1095_vm14, %v2054_v51, %v2074_v45  ;;  %v1400_v26 = vsel %vm1095_vm14, %v2055_v50, %v2075_v54  ;;  %v1401_v56 = vsel %vm1095_vm14, %v2074_v45, %v2054_v51  ;;  %v1402_v57 = vsel %vm1095_vm14, %v2075_v54, %v2055_v50  ;;  %v2058_v58 = vpop.permute.xlu0 %2057  ;;  %1869 = vmatpush1.bf16.msk.msra.mxu0 %vm3194_vm3, %v1868_v49  ;;  %vm3199_vm14 = vmmov %vm3197_vm1 }
 0x60a   : > { %v1871_v17 = vpack.c.bf16 %v1400_v26, %v1399_v55  ;;  %v1874_v18 = vpack.c.bf16 %v1402_v57, %v1401_v56  ;;  %v2060_v23 = vunpack.i.h.bf16 %v2058_v58  ;;  %v2059_v16 = vunpack.i.l.bf16 %v2058_v58  ;;  %v2078_v24 = vpop.permute.xlu1 %2077  ;;  %vm3200_vm11 = vmmov %vm3197_vm1 }
 0x60b   : > { %v2080_v6 = vunpack.i.h.bf16 %v2078_v24  ;;  %v2079_v25 = vunpack.i.l.bf16 %v2078_v24  ;;  %vm3204_vm3 = vcmp.lt.s32.totalorder %v2349_v14, 125 }
 0x60c   : > { %1872 = vmatprep.subr.msk.bf16.mxu0 %vm2966_vm10, %v1871_v17 }
 0x60d   : > { %v1423_v21 = vsel %vm3197_vm1, %v2059_v16, %v2079_v25  ;;  %v1424_v12 = vsel %vm3198_vm8, %v2060_v23, %v2080_v6  ;;  %v1425_v38 = vsel %vm3199_vm14, %v2079_v25, %v2059_v16  ;;  %v1426_v2 = vsel %vm3200_vm11, %v2080_v6, %v2060_v23  ;;  %v2083_v3 = vpop.permute.xlu0 %2082  ;;  %1875 = vmatpush1.bf16.msk.msra.mxu0 %vm1873_vm6, %v1874_v18  ;;  %vm3205_vm6 = vmmov %vm3204_vm3 }
 0x60e   : > { %v1877_v9 = vpack.c.bf16 %v1424_v12, %v1423_v21  ;;  %v1880_v10 = vpack.c.bf16 %v1426_v2, %v1425_v38  ;;  %v2085_v13 = vunpack.i.h.bf16 %v2083_v3  ;;  %v2084_v19 = vunpack.i.l.bf16 %v2083_v3  ;;  %v2103_v22 = vpop.permute.xlu1 %2102  ;;  %vm3207_vm1 = vmmov %vm3204_vm3 }
 0x60f   : > { %v2105_v29 = vunpack.i.h.bf16 %v2103_v22  ;;  %v2104_v31 = vunpack.i.l.bf16 %v2103_v22  ;;  %vm3208_vm8 = vcmp.lt.s32.totalorder %v2349_v14, 115  ;;  %vm3017_vm11 = vmpackc.low %vm1011_vm12, %vm1011_vm12 }
 0x610   : > { %1878 = vmatprep.subr.msk.bf16.mxu0 %vm2933_vm15, %v1877_v9  ;;  %vm3206_vm15 = vmmov %vm3204_vm3 }
 0x611   : > { %v1453_v32 = vsel %vm3204_vm3, %v2104_v31, %v2084_v19  ;;  %v1454_v33 = vsel %vm3205_vm6, %v2105_v29, %v2085_v13  ;;  %v2088_v34 = vpop.permute.xlu0 %2087  ;;  %1881 = vmatpush1.bf16.msk.msra.mxu0 %vm2986_vm2, %v1880_v10  ;;  %v1451_v41 = vsel %vm3206_vm15, %v2084_v19, %v2104_v31  ;;  %v1452_v42 = vsel %vm3207_vm1, %v2085_v13, %v2105_v29  ;;  %vm3209_vm14 = vmmov %vm3208_vm8 }
 0x612   : > { %v2090_v35 = vunpack.i.h.bf16 %v2088_v34  ;;  %v2089_v37 = vunpack.i.l.bf16 %v2088_v34  ;;  %v2108_v36 = vpop.permute.xlu1 %2107  ;;  %1589 = vmatprep.subr.bf16.mxu0 %v1440_v4  ;;  %v1883_v43 = vpack.c.bf16 %v1454_v33, %v1453_v32  ;;  %v1886_v48 = vpack.c.bf16 %v1452_v42, %v1451_v41  ;;  %vm3212_vm3 = vmmov %vm3208_vm8 }
 0x613   : > { %v2110_v40 = vunpack.i.h.bf16 %v2108_v36  ;;  %v2109_v39 = vunpack.i.l.bf16 %v2108_v36  ;;  %vm3213_vm6 = vmmov %vm3212_vm3 }
 0x614   : > { %vm3218_vm1 = vmpackc.low %vm2429_vm13, %vm2429_vm13  ;;  %vm3219_vm13 = vcmask 130048  }
 0x615   : > { %v1477_v44 = vsel %vm3208_vm8, %v2109_v39, %v2089_v37  ;;  %v1478_v46 = vsel %vm3209_vm14, %v2110_v40, %v2090_v35  ;;  %v2093_v47 = vpop.permute.xlu0 %2092  ;;  %1590 = vmatpush1.bf16.msra.mxu0 %v1439_v11  ;;  %v1475_v60 = vsel %vm3212_vm3, %v2089_v37, %v2109_v39  ;;  %v1476_v61 = vsel %vm3213_vm6, %v2090_v35, %v2110_v40  ;;  %vm1897_vm8 = vmpackc.low %vm2851_vm4, %vm2851_vm4  ;;  %v1810_v37 = vld [vmem:[%s3123_s5 + $0x1] sm:$0x1] }
 0x616   : > { %v2095_v0 = vunpack.i.h.bf16 %v2093_v47  ;;  %v2094_v15 = vunpack.i.l.bf16 %v2093_v47  ;;  %v2113_v4 = vpop.permute.xlu1 %2112  ;;  %1884 = vmatprep.subr.msk.bf16.mxu0 %vm2966_vm10, %v1883_v43  ;;  %v1889_v11 = vpack.c.bf16 %v1478_v46, %v1477_v44  ;;  %vm3214_vm10 = vcmp.lt.s32.totalorder %v2349_v14, 112 }
 0x617   : > { %v2115_v49 = vunpack.i.h.bf16 %v2113_v4  ;;  %v2114_v50 = vunpack.i.l.bf16 %v2113_v4  ;;  %vm3215_vm12 = vmmov %vm3214_vm10  ;;  %v1892_v45 = vpack.c.bf16 %v1476_v61, %v1475_v60 }
 0x618   : > { %vm3216_vm7 = vmmov %vm3214_vm10 }
 0x619   : > { %v1501_v20 = vsel %vm3214_vm10, %v2114_v50, %v2094_v15  ;;  %v1502_v51 = vsel %vm3215_vm12, %v2115_v49, %v2095_v0  ;;  %v2098_v52 = vpop.permute.xlu0 %2097  ;;  %1887 = vmatpush1.bf16.msk.msra.mxu0 %vm3017_vm11, %v1886_v48  ;;  %v1499_v56 = vsel %vm3216_vm7, %v2094_v15, %v2114_v50  ;;  %vm3217_vm15 = vmmov %vm3216_vm7 }
 0x61a   : > { %v2100_v63 = vunpack.i.h.bf16 %v2098_v52  ;;  %v2099_v53 = vunpack.i.l.bf16 %v2098_v52  ;;  %v2118_v54 = vpop.permute.xlu1 %2117  ;;  %1890 = vmatprep.subr.msk.bf16.mxu0 %vm1888_vm5, %v1889_v11  ;;  %v1500_v57 = vsel %vm3217_vm15, %v2095_v0, %v2115_v49  ;;  %v1895_v58 = vpack.c.bf16 %v1502_v51, %v1501_v20 }
 0x61b   : > { %v2120_v55 = vunpack.i.h.bf16 %v2118_v54  ;;  %v2119_v26 = vunpack.i.l.bf16 %v2118_v54  ;;  %v1507_v18 = vpack.c.bf16 %v1500_v57, %v1499_v56 }
 0x61d   : > { %v1521_v59 = vsel %vm1241_vm9, %v2119_v26, %v2099_v53  ;;  %v1522_v17 = vsel %vm1241_vm9, %v2120_v55, %v2100_v63  ;;  %1893 = vmatpush1.bf16.msk.msra.mxu0 %vm2986_vm2, %v1892_v45  ;;  %v1519_v23 = vsel %vm1241_vm9, %v2099_v53, %v2119_v26  ;;  %v1520_v16 = vsel %vm1241_vm9, %v2100_v63, %v2120_v55 }
 0x61e   : > { %1896 = vmatprep.subr.msk.bf16.mxu0 %vm3218_vm1, %v1895_v58  ;;  %v1898_v24 = vpack.c.bf16 %v1522_v17, %v1521_v59  ;;  %v1901_v6 = vpack.c.bf16 %v1520_v16, %v1519_v23 }
 0x621   : > { %1596 = vmatpush1.bf16.msra.mxu0 %v1507_v18 }
 0x622   : > { %1899 = vmatprep.subr.msk.bf16.mxu0 %vm1897_vm8, %v1898_v24 }
 0x625   : > { %1902 = vmatpush1.bf16.msk.msra.mxu0 %vm3017_vm11, %v1901_v6 }
 0x628   : > { %1614 = vmatmul.mubr.bf16.vlgmr.msra.gmra.mrb[8].mxu0 %v2128_v62 }
 0x62a   : > { %v1562_v30 = vpop.permute.xlu0 %1561 }
 0x62b   : > { %v1567_v38 = vpop.permute.xlu1 %1566 }
 0x62e   : > { %v1641_v36 = vpop.permute.xlu0 %1640 }
 0x62f   : > { %v1646_v40 = vrot.slane %v1641_v36, %v2310_v5 }
 0x6fb   : > { %v1615_v25 = vpop.f32.mrb[8].mxu0 }
 0x6fc   : > { %v1616_v21 = vadd.f32 %v1615_v25, %v1562_v30  ;;  %v1617_v12 = vpop.f32.mrb[9].mxu0 }
 0x6fd   : > { %v1618_v2 = vadd.f32 %v1617_v12, %v1562_v30  ;;  %v1619_v14 = vpop.f32.mrb[10].mxu0 }
 0x6fe   : > { %v1624_v3 = vmul.f32 0.01, %v1616_v21  ;;  %v1620_v9 = vadd.f32 %v1619_v14, %v1567_v38  ;;  %v1621_v10 = vpop.f32.mrb[11].mxu0 }
 0x6ff   : > { %v1625_v13 = vmul.f32 0.01, %v1618_v2  ;;  %v1622_v19 = vadd.f32 %v1621_v10, %v1567_v38 }
 0x700   : > { %v1626_v22 = vmul.f32 0.01, %v1620_v9  ;;  %v1628_v29 = vmax.f32 %v1616_v21, %v1624_v3 }
 0x701   : > { %v1627_v28 = vmul.f32 0.01, %v1622_v19  ;;  %v1629_v32 = vmax.f32 %v1618_v2, %v1625_v13 }
 0x702   : > { %v1630_v31 = vmax.f32 %v1620_v9, %v1626_v22 }
 0x703   : > { %v1631_v33 = vmax.f32 %v1622_v19, %v1627_v28 }
 0x704   : > { %v1634_v34 = vpack.c.bf16 %v1630_v31, %v1628_v29 }
 0x705   : > { %v1635_v35 = vpack.c.bf16 %v1631_v33, %v1629_v32 }
 0x707   : > { %1650 = vmatprep.subr.bf16.mxu1 %v1635_v35 }
 0x708   : > { %1651 = vmatpush1.bf16.msra.mxu1 %v1634_v34 }
 0x70b   : > { %1812 = vmatmul.mubr.msk.bf16.vlgmr.msra.gmra.mrb[8].mxu1 %vm3219_vm13, %v1810_v37 }
 0x7de   : > { %v1684_v39 = vpop.f32.mrb[8].mxu1 }
 0x7df   : > { %v1685_v41 = vadd.f32 %v1684_v39, %v1646_v40  ;;  %v1686_v42 = vpop.f32.mrb[9].mxu1 }
 0x7e0   : > { %v1687_v43 = vadd.f32 %v1686_v42, %v1646_v40  ;;  %v1688_v44 = vpop.f32.mrb[10].mxu1 }
 0x7e1   : > { %v1689_v46 = vpop.f32.mrb[11].mxu1 }
 0x7e2   : > { %v1693_v47 = vcombine.low %v1685_v41, %v1687_v43 }
 0x7e4   : > { %v1700_v0 = vrot.slane %v1693_v47, %v2374_v27 }
 0x7e6   : > { %v1707_v15 = vrot.slane %v1700_v0, %v2374_v27 }
 0x7e8   : > { %v1709_v4 = vadd.f32 %v1707_v15, %v2708_v1 }
 0x7ea   : > { %1710 = vst.msk [vmem:[%s269_s19] sm:$0x3] %vm2314_vm0, %v1709_v4 }
 0x7eb   : > { %2142 = shalt.err (!%p2139_p3)
}
 0x7ec   : > { %s2143_s8 = scalar_lea.hbm %s3074_s22, 32  ;;  %s2147_s17 = scalar_lea.hbm %s3125_s7, 64 }
 0x7ed   : > { %p2144_p4 = scmp.ne.s32.totalorder %s3074_s22, %s2143_s8  ;;  %p2148_p9 = scmp.lt.u32.totalorder %s3074_s22, %s3125_s7 }
 0x7ee   : > { %p2149_p10 = scmp.lt.u32.totalorder %s2147_s17, %s2143_s8  ;;  %p2151_p12 = scmp.lt.u32.totalorder %s2143_s8, %s3074_s22 }
 0x7ef   : > { %p2145_p7 = pnand %p2144_p4, %p2289_p5 }
 0x7f0   : > { %p2150_p11 = por %p2149_p10, %p2148_p9 }
 0x7f1   : > { %p2146_p8 = pneg %p2145_p7 }
 0x7f2   : > { %p2152_p13 = por %p2151_p12, %p2150_p11 }
 0x7f4   : > { %p2153_p0 = pnand %p2152_p13, %p2146_p8 }
 0x7f6   : > { %2156 = shalt.err (!%p2153_p0)
}
 0x7f7   : > { %1903 = dma.vmem_to_hbm [thread:$0]  (%p2289_p5), %s3076_s9, 32, %s3074_s22, %s1712_s28  }
 0x7f8 PF: > { %p1909_p1 = scmp.ge.s32.totalorder %s2191_s27, 2  ;;  %s1738_s20 = sand.u32 1, %s2179_s24  }
 0x7f9   : > { %s1739_s21 = scalar_lea.sflag [#allocation5], %s1738_s20 }
 0x7fa   : > { %p1906_p2 = pnand %p1909_p1, %p2293_p6 }
 0x7fc   : > { %2174 = dma.done.wait (!%p1906_p2), %s1739_s21, 32  }
 0x7fd   : > { %2176 = vsyncadd (!%p1906_p2), %s1739_s21, 4294967264  ;;  %p17_p3 = scmp.ge.s32.totalorder %s2276_s30, 4   ;;  %s3220_s24 = smov %s2183_s25 }
 0x7fe   : > { %s3221_s25 = smov %s2187_s26  ;;  %s3222_s26 = smov %s2287_s10 }
 0x7ff   : > { %s3223_s27 = smov %s2276_s30  ;;  %19 = sbr.rel (!%p17_p3) target bundleno = 3 (0x3), region = 97 }
 0x806   :  { %1744 = vsyncpa [#allocation5], 1 }
 0x807   :  { %1746 = vsyncpa [#allocation5 + $0x1], 1 }

</bundles_post_ra>
